<compile_context>
chip_gen: v6e
topology: v6e:2x2x1
jax: 0.10.0
libtpu: 0.0.40
codegen_flags: <defaults>
</compile_context>

<pallas_src>
import functools
import math

import jax
import jax.numpy as jnp
import numpy as np
from jax.experimental import pallas as pl
from jax.experimental.pallas import tpu as pltpu


# ---------------------------------------------------------------------------
# One DecoderLayer, one batch element per grid step.
# ---------------------------------------------------------------------------
def decoder_layer_kernel(
    x_ref, e_ref, trg_mask_ref, src_mask_ref,
    a1_ref, g1_ref,                     # norm_1 alpha / bias            (1, D)
    wqkv1_ref, bqkv1_ref,               # fused self-attn QKV            (D, 3D), (1, 3D)
    wo1_ref, bo1_ref,                   # self-attn out proj (per head)  (H, dk, D), (1, D)
    a2_ref, g2_ref,                     # norm_2
    wq2_ref, bq2_ref,                   # cross-attn Q                   (D, D), (1, D)
    wkv2_ref, bkv2_ref,                 # fused cross-attn KV            (D, 2D), (1, 2D)
    wo2_ref, bo2_ref,                   # cross-attn out proj (per head) (H, dk, D), (1, D)
    a3_ref, g3_ref,                     # norm_3
    w1_ref, b1_ref, w2_ref, b2_ref,     # feed-forward
    o_ref,
    *, heads, eps):
    f32, bf16 = jnp.float32, jnp.bfloat16

    x = x_ref[0].astype(f32)            # (S, D) residual stream, kept in f32
    S, D = x.shape
    H = heads
    dk = D // H
    scale = 1.0 / math.sqrt(dk)

    # Masks hoisted once per grid step into additive biases (0 / -1e9) shared
    # by every head -> no per-head compare+select.
    trg_bias = jnp.where(trg_mask_ref[0] == 0.0, f32(-1e9), f32(0.0))  # (S, S)
    src_bias = jnp.where(src_mask_ref[0] == 0.0, f32(-1e9), f32(0.0))  # (1, Se)

    def layer_norm(z, alpha, beta):
        # torch.Tensor.std() is unbiased (divide by D-1); eps is added to std.
        mean = jnp.mean(z, axis=-1, keepdims=True)
        var = jnp.sum((z - mean) ** 2, axis=-1, keepdims=True) / (D - 1)
        inv = pl.reciprocal(jnp.sqrt(var) + eps, approx=True)   # EUP, not VPU divide
        return alpha * (z - mean) * inv + beta

    def split_heads(t):
        # (s, H*dk) f32 -> (H, s, dk) bf16.  One static-slice + leading-axis
        # stack relayout; all matmuls below are head-batched (no per-head MXU
        # calls, no output concat, no transposes).
        return jnp.stack([t[:, h * dk:(h + 1) * dk] for h in range(H)],
                         axis=0).astype(bf16)

    def attention(q_lin, k_lin, v_lin, bias_add, wo_r_ref, bo_ref):
        # q_lin (S, D), k_lin / v_lin (Sk, D), f32, biases already added.
        qh = split_heads(q_lin * scale)          # scale folded into q
        kh = split_heads(k_lin)
        vh = split_heads(v_lin)
        s = jnp.einsum("hqd,hkd->hqk", qh, kh,
                       preferred_element_type=f32)            # (H, S, Sk)
        s = s + bias_add                                      # mask bias
        m = jnp.max(s, axis=-1, keepdims=True)
        p = jnp.exp(s - m)
        p = p * pl.reciprocal(jnp.sum(p, axis=-1, keepdims=True), approx=True)
        # TODO(synk): attention-weight dropout omitted (module run in eval mode).
        o = jnp.einsum("hqk,hkd->hqd", p.astype(bf16), vh,
                       preferred_element_type=f32)            # (H, S, dk)
        # concat(heads) @ Wo == sum_h o_h @ Wo[h*dk:(h+1)*dk, :]; Wo is passed
        # pre-reshaped to (H, dk, D), so this is one batched matmul + a cheap
        # head-sum instead of a concat / relayout.
        proj = jnp.einsum("hqd,hde->hqe", o.astype(bf16), wo_r_ref[...],
                          preferred_element_type=f32)         # (H, S, D)
        return jnp.sum(proj, axis=0) + bo_ref[0]

    # ---- sublayer 1: masked self-attention --------------------------------
    x2 = layer_norm(x, a1_ref[0], g1_ref[0])
    qkv = jnp.dot(x2.astype(bf16), wqkv1_ref[...],
                  preferred_element_type=f32) + bqkv1_ref[0]   # (S, 3D)
    x = x + attention(qkv[:, :D], qkv[:, D:2 * D], qkv[:, 2 * D:],
                      trg_bias, wo1_ref, bo1_ref)              # dropout_1 = id

    # ---- sublayer 2: cross-attention over encoder outputs -----------------
    e = e_ref[0].astype(bf16)                                  # (Se, D)
    x2 = layer_norm(x, a2_ref[0], g2_ref[0])
    q2 = jnp.dot(x2.astype(bf16), wq2_ref[...],
                 preferred_element_type=f32) + bq2_ref[0]      # (S, D)
    kv = jnp.dot(e, wkv2_ref[...],
                 preferred_element_type=f32) + bkv2_ref[0]     # (Se, 2D)
    x = x + attention(q2, kv[:, :D], kv[:, D:],
                      src_bias, wo2_ref, bo2_ref)              # dropout_2 = id

    # ---- sublayer 3: feed-forward ------------------------------------------
    x2 = layer_norm(x, a3_ref[0], g3_ref[0])
    h1 = jnp.maximum(
        jnp.dot(x2.astype(bf16), w1_ref[...],
                preferred_element_type=f32) + b1_ref[0], 0.0)  # ReLU; ff dropout = id
    ff = jnp.dot(h1.astype(bf16), w2_ref[...],
                 preferred_element_type=f32) + b2_ref[0]

    o_ref[0] = (x + ff).astype(o_ref.dtype)                    # dropout_3 = id


def decoder_layer(x, e_outputs, src_mask, trg_mask, lp, *, heads, eps=1e-6):
    """x: (B,S,D); e_outputs: (B,Se,D); src_mask: (B,1,Se); trg_mask: (B,S,S)."""
    B, S, D = x.shape
    Se = e_outputs.shape[1]
    dk = D // heads
    d_ff = lp["w1"].shape[1]
    bf16 = jnp.bfloat16

    a1p, a2p = lp["attn1"], lp["attn2"]
    # Fused / reshaped bf16 weights (f32 masters stay outside; bf16 halves
    # weight DMA + VMEM, accumulation in the kernel is still f32).
    wqkv1 = jnp.concatenate([a1p["wq"], a1p["wk"], a1p["wv"]], axis=1).astype(bf16)
    bqkv1 = jnp.concatenate([a1p["bq"], a1p["bk"], a1p["bv"]], axis=1)
    wo1_r = a1p["wo"].reshape(heads, dk, D).astype(bf16)
    wq2 = a2p["wq"].astype(bf16)
    wkv2 = jnp.concatenate([a2p["wk"], a2p["wv"]], axis=1).astype(bf16)
    bkv2 = jnp.concatenate([a2p["bk"], a2p["bv"]], axis=1)
    wo2_r = a2p["wo"].reshape(heads, dk, D).astype(bf16)
    w1 = lp["w1"].astype(bf16)
    w2 = lp["w2"].astype(bf16)

    def per_batch(shape):
        n = len(shape)
        return pl.BlockSpec(shape, lambda b: (b,) + (0,) * (n - 1))

    def rep(shape):  # replicated weight: same block every grid step
        n = len(shape)
        return pl.BlockSpec(shape, lambda b: (0,) * n)

    in_specs = [
        per_batch((1, S, D)),                   # x
        per_batch((1, Se, D)),                  # e_outputs
        per_batch((1, S, S)),                   # trg_mask
        per_batch((1, 1, Se)),                  # src_mask
        rep((1, D)), rep((1, D)),               # norm_1 alpha / bias
        rep((D, 3 * D)), rep((1, 3 * D)),       # wqkv1, bqkv1
        rep((heads, dk, D)), rep((1, D)),       # wo1_r, bo1
        rep((1, D)), rep((1, D)),               # norm_2
        rep((D, D)), rep((1, D)),               # wq2, bq2
        rep((D, 2 * D)), rep((1, 2 * D)),       # wkv2, bkv2
        rep((heads, dk, D)), rep((1, D)),       # wo2_r, bo2
        rep((1, D)), rep((1, D)),               # norm_3
        rep((D, d_ff)), rep((1, d_ff)),         # w1, b1
        rep((d_ff, D)), rep((1, D)),            # w2, b2
    ]

    kernel = functools.partial(decoder_layer_kernel, heads=heads, eps=eps)
    return pl.pallas_call(
        kernel,
        out_shape=jax.ShapeDtypeStruct((B, S, D), x.dtype),
        grid_spec=pltpu.PrefetchScalarGridSpec(
            num_scalar_prefetch=0,
            grid=(B,),
            in_specs=in_specs,
            out_specs=pl.BlockSpec((1, S, D), lambda b: (b, 0, 0)),
        ),
        compiler_params=pltpu.CompilerParams(
            dimension_semantics=("parallel",),   # shard batch over v7x's 2 TCs
            vmem_limit_bytes=64 * 1024 * 1024),
    )(x, e_outputs, trg_mask, src_mask,
      lp["alpha1"], lp["beta1"],
      wqkv1, bqkv1, wo1_r, a1p["bo"],
      lp["alpha2"], lp["beta2"],
      wq2, a2p["bq"], wkv2, bkv2, wo2_r, a2p["bo"],
      lp["alpha3"], lp["beta3"],
      w1, lp["b1"], w2, lp["b2"])


# ---------------------------------------------------------------------------
# Final NormLayer (small Pallas kernel).
# ---------------------------------------------------------------------------
def final_norm_kernel(x_ref, a_ref, g_ref, o_ref, *, eps):
    x = x_ref[0].astype(jnp.float32)
    D = x.shape[-1]
    mean = jnp.mean(x, axis=-1, keepdims=True)
    var = jnp.sum((x - mean) ** 2, axis=-1, keepdims=True) / (D - 1)
    inv = pl.reciprocal(jnp.sqrt(var) + eps, approx=True)
    o_ref[0] = (a_ref[0] * (x - mean) * inv + g_ref[0]).astype(o_ref.dtype)


def final_norm(x, alpha, beta, *, eps=1e-6):
    B, S, D = x.shape
    return pl.pallas_call(
        functools.partial(final_norm_kernel, eps=eps),
        out_shape=jax.ShapeDtypeStruct((B, S, D), x.dtype),
        grid_spec=pltpu.PrefetchScalarGridSpec(
            num_scalar_prefetch=0,
            grid=(B,),
            in_specs=[pl.BlockSpec((1, S, D), lambda b: (b, 0, 0)),
                      pl.BlockSpec((1, D), lambda b: (0, 0)),
                      pl.BlockSpec((1, D), lambda b: (0, 0))],
            out_specs=pl.BlockSpec((1, S, D), lambda b: (b, 0, 0)),
        ),
        compiler_params=pltpu.CompilerParams(dimension_semantics=("parallel",)),
    )(x, alpha, beta)


# ---------------------------------------------------------------------------
# Full Decoder forward.
# ---------------------------------------------------------------------------
def decoder_forward(trg_ids, e_outputs, src_mask, trg_mask, params, *, heads,
                    eps=1e-6):
    embed, pe = params["embed"], params["pe"]
    D = embed.shape[1]
    S = trg_ids.shape[1]
    # TODO(synk): embedding gather + positional-encoding add are left to XLA
    # (data-dependent gather; negligible work next to the decoder layers).
    x = embed[trg_ids] * jnp.sqrt(jnp.float32(D)) + pe[None, :S]
    for lp in params["layers"]:
        x = decoder_layer(x, e_outputs, src_mask, trg_mask, lp,
                          heads=heads, eps=eps)
    return final_norm(x, params["alpha_f"], params["beta_f"], eps=eps)


# ------------------------------ pure-JAX reference -------------------------
def decoder_ref(trg_ids, e_outputs, src_mask, trg_mask, params, *, heads,
                eps=1e-6):
    embed, pe = params["embed"], params["pe"]
    D = embed.shape[1]
    H = heads
    dk = D // H
    B, S = trg_ids.shape
    x = embed[trg_ids] * jnp.sqrt(jnp.float32(D)) + pe[None, :S]

    def layer_norm(z, alpha, beta):
        mean = jnp.mean(z, axis=-1, keepdims=True)
        var = jnp.sum((z - mean) ** 2, axis=-1, keepdims=True) / (D - 1)
        return alpha[0] * (z - mean) / (jnp.sqrt(var) + eps) + beta[0]

    def mha(q_in, kv_in, mask, p):
        Sq, Sk = q_in.shape[1], kv_in.shape[1]
        q = (q_in @ p["wq"] + p["bq"][0]).reshape(B, Sq, H, dk).transpose(0, 2, 1, 3)
        k = (kv_in @ p["wk"] + p["bk"][0]).reshape(B, Sk, H, dk).transpose(0, 2, 1, 3)
        v = (kv_in @ p["wv"] + p["bv"][0]).reshape(B, Sk, H, dk).transpose(0, 2, 1, 3)
        s = jnp.einsum("bhqd,bhkd->bhqk", q, k) / jnp.sqrt(jnp.float32(dk))
        s = jnp.where(mask[:, None] == 0.0, -1e9, s)
        a = jax.nn.softmax(s, axis=-1)
        o = jnp.einsum("bhqk,bhkd->bhqd", a, v)
        concat = o.transpose(0, 2, 1, 3).reshape(B, Sq, D)
        return concat @ p["wo"] + p["bo"][0]

    for lp in params["layers"]:
        x2 = layer_norm(x, lp["alpha1"], lp["beta1"])
        x = x + mha(x2, x2, trg_mask, lp["attn1"])
        x2 = layer_norm(x, lp["alpha2"], lp["beta2"])
        x = x + mha(x2, e_outputs, src_mask, lp["attn2"])
        x2 = layer_norm(x, lp["alpha3"], lp["beta3"])
        h1 = jnp.maximum(x2 @ lp["w1"] + lp["b1"][0], 0.0)
        x = x + h1 @ lp["w2"] + lp["b2"][0]
    return layer_norm(x, params["alpha_f"], params["beta_f"])


if __name__ == "__main__":
    B, S, SE, D, H, N_LAYERS = 2, 8, 16, 32, 4, 2
    D_FF = 2048          # FeedForward default d_ff
    VOCAB, MAX_SEQ = 50, 80

    keys = iter(jax.random.split(jax.random.PRNGKey(0), 256))

    def w(shape, scale=0.05):
        return (scale * jax.random.normal(next(keys), shape)).astype(jnp.float32)

    def mha_params():
        return {"wq": w((D, D)), "bq": w((1, D)),
                "wk": w((D, D)), "bk": w((1, D)),
                "wv": w((D, D)), "bv": w((1, D)),
                "wo": w((D, D)), "bo": w((1, D))}

    def layer_params():
        return {
            "alpha1": 1.0 + w((1, D)), "beta1": w((1, D)),
            "alpha2": 1.0 + w((1, D)), "beta2": w((1, D)),
            "alpha3": 1.0 + w((1, D)), "beta3": w((1, D)),
            "attn1": mha_params(), "attn2": mha_params(),
            "w1": w((D, D_FF)), "b1": w((1, D_FF)),
            "w2": w((D_FF, D)), "b2": w((1, D)),
        }

    # PositionalEncoder buffer built exactly like the PyTorch loop
    # (including its use of (i+1) inside the cosine exponent).
    pe_np = np.zeros((MAX_SEQ, D), np.float32)
    for pos in range(MAX_SEQ):
        for i in range(0, D, 2):
            pe_np[pos, i] = math.sin(pos / 10000 ** (2 * i / D))
            pe_np[pos, i + 1] = math.cos(pos / 10000 ** (2 * (i + 1) / D))

    params = {
        "embed": w((VOCAB, D), scale=0.3),
        "pe": jnp.asarray(pe_np),
        "layers": [layer_params() for _ in range(N_LAYERS)],
        "alpha_f": 1.0 + w((1, D)), "beta_f": w((1, D)),
    }

    trg_ids = jax.random.randint(next(keys), (B, S), 0, VOCAB)
    e_outputs = (0.5 * jax.random.normal(next(keys), (B, SE, D))).astype(jnp.float32)

    # target mask: causal + the last target position of batch 1 is padding
    trg_mask = jnp.broadcast_to(jnp.tril(jnp.ones((S, S), jnp.float32)), (B, S, S))
    trg_mask = trg_mask.at[1, :, S - 1].set(0.0)
    # source mask: last two encoder positions of batch 1 are padding
    src_mask = jnp.ones((B, 1, SE), jnp.float32)
    src_mask = src_mask.at[1, 0, SE - 2:].set(0.0)

    out = decoder_forward(trg_ids, e_outputs, src_mask, trg_mask, params, heads=H)
    out = jax.block_until_ready(out)

    ref = decoder_ref(trg_ids, e_outputs, src_mask, trg_mask, params, heads=H)
    # bf16 matmuls (f32 accumulation) + approx reciprocals -> tolerance is
    # loosened vs. the all-f32 reference.
    np.testing.assert_allclose(np.asarray(out), np.asarray(ref),
                               rtol=2e-2, atol=2e-2)
    print("KERNEL_OK")
</pallas_src>

<mosaic_0001>
module attributes {stable_mosaic.version = 11 : i64} {
  func.func @decoder_layer_kernel(%arg0: i32, %arg1: memref<1x8x32xf32, #tpu.memory_space<vmem>>, %arg2: memref<1x16x32xf32, #tpu.memory_space<vmem>>, %arg3: memref<1x8x8xf32, #tpu.memory_space<vmem>>, %arg4: memref<1x1x16xf32, #tpu.memory_space<vmem>>, %arg5: memref<1x32xf32, #tpu.memory_space<vmem>>, %arg6: memref<1x32xf32, #tpu.memory_space<vmem>>, %arg7: memref<32x96xbf16, #tpu.memory_space<vmem>>, %arg8: memref<1x96xf32, #tpu.memory_space<vmem>>, %arg9: memref<4x8x32xbf16, #tpu.memory_space<vmem>>, %arg10: memref<1x32xf32, #tpu.memory_space<vmem>>, %arg11: memref<1x32xf32, #tpu.memory_space<vmem>>, %arg12: memref<1x32xf32, #tpu.memory_space<vmem>>, %arg13: memref<32x32xbf16, #tpu.memory_space<vmem>>, %arg14: memref<1x32xf32, #tpu.memory_space<vmem>>, %arg15: memref<32x64xbf16, #tpu.memory_space<vmem>>, %arg16: memref<1x64xf32, #tpu.memory_space<vmem>>, %arg17: memref<4x8x32xbf16, #tpu.memory_space<vmem>>, %arg18: memref<1x32xf32, #tpu.memory_space<vmem>>, %arg19: memref<1x32xf32, #tpu.memory_space<vmem>>, %arg20: memref<1x32xf32, #tpu.memory_space<vmem>>, %arg21: memref<32x2048xbf16, #tpu.memory_space<vmem>>, %arg22: memref<1x2048xf32, #tpu.memory_space<vmem>>, %arg23: memref<2048x32xbf16, #tpu.memory_space<vmem>>, %arg24: memref<1x32xf32, #tpu.memory_space<vmem>>, %arg25: memref<1x8x32xf32, #tpu.memory_space<vmem>>) attributes {dimension_semantics = [#tpu.dimension_semantics<parallel>], iteration_bounds = array<i64: 2>, scalar_prefetch = 0 : i64, scratch_operands = 0 : i64, tpu.core_type = #tpu.core_type<tc>, window_params = [{transform_indices = @transform_0, window_bounds = array<i64: 1, 8, 32>}, {transform_indices = @transform_1, window_bounds = array<i64: 1, 16, 32>}, {transform_indices = @transform_2, window_bounds = array<i64: 1, 8, 8>}, {transform_indices = @transform_3, window_bounds = array<i64: 1, 1, 16>}, {pipeline_mode = #tpu.pipeline_mode<synchronous>, transform_indices = @transform_4, window_bounds = array<i64: 1, 32>}, {pipeline_mode = #tpu.pipeline_mode<synchronous>, transform_indices = @transform_5, window_bounds = array<i64: 1, 32>}, {pipeline_mode = #tpu.pipeline_mode<synchronous>, transform_indices = @transform_6, window_bounds = array<i64: 32, 96>}, {pipeline_mode = #tpu.pipeline_mode<synchronous>, transform_indices = @transform_7, window_bounds = array<i64: 1, 96>}, {pipeline_mode = #tpu.pipeline_mode<synchronous>, transform_indices = @transform_8, window_bounds = array<i64: 4, 8, 32>}, {pipeline_mode = #tpu.pipeline_mode<synchronous>, transform_indices = @transform_9, window_bounds = array<i64: 1, 32>}, {pipeline_mode = #tpu.pipeline_mode<synchronous>, transform_indices = @transform_10, window_bounds = array<i64: 1, 32>}, {pipeline_mode = #tpu.pipeline_mode<synchronous>, transform_indices = @transform_11, window_bounds = array<i64: 1, 32>}, {pipeline_mode = #tpu.pipeline_mode<synchronous>, transform_indices = @transform_12, window_bounds = array<i64: 32, 32>}, {pipeline_mode = #tpu.pipeline_mode<synchronous>, transform_indices = @transform_13, window_bounds = array<i64: 1, 32>}, {pipeline_mode = #tpu.pipeline_mode<synchronous>, transform_indices = @transform_14, window_bounds = array<i64: 32, 64>}, {pipeline_mode = #tpu.pipeline_mode<synchronous>, transform_indices = @transform_15, window_bounds = array<i64: 1, 64>}, {pipeline_mode = #tpu.pipeline_mode<synchronous>, transform_indices = @transform_16, window_bounds = array<i64: 4, 8, 32>}, {pipeline_mode = #tpu.pipeline_mode<synchronous>, transform_indices = @transform_17, window_bounds = array<i64: 1, 32>}, {pipeline_mode = #tpu.pipeline_mode<synchronous>, transform_indices = @transform_18, window_bounds = array<i64: 1, 32>}, {pipeline_mode = #tpu.pipeline_mode<synchronous>, transform_indices = @transform_19, window_bounds = array<i64: 1, 32>}, {pipeline_mode = #tpu.pipeline_mode<synchronous>, transform_indices = @transform_20, window_bounds = array<i64: 32, 2048>}, {pipeline_mode = #tpu.pipeline_mode<synchronous>, transform_indices = @transform_21, window_bounds = array<i64: 1, 2048>}, {pipeline_mode = #tpu.pipeline_mode<synchronous>, transform_indices = @transform_22, window_bounds = array<i64: 2048, 32>}, {pipeline_mode = #tpu.pipeline_mode<synchronous>, transform_indices = @transform_23, window_bounds = array<i64: 1, 32>}, {transform_indices = @transform_24, window_bounds = array<i64: 1, 8, 32>}]} {
    %c0 = arith.constant 0 : index
    %c0_0 = arith.constant 0 : index
    %c0_1 = arith.constant 0 : index
    %0 = vector.load %arg1[%c0, %c0_0, %c0_1] : memref<1x8x32xf32, #tpu.memory_space<vmem>>, vector<1x8x32xf32>
    %1 = vector.shape_cast %0 : vector<1x8x32xf32> to vector<8x32xf32>
    %c0_2 = arith.constant 0 : index
    %c0_3 = arith.constant 0 : index
    %c0_4 = arith.constant 0 : index
    %2 = vector.load %arg3[%c0_2, %c0_3, %c0_4] : memref<1x8x8xf32, #tpu.memory_space<vmem>>, vector<1x8x8xf32>
    %3 = vector.shape_cast %2 : vector<1x8x8xf32> to vector<8x8xf32>
    %cst = arith.constant 0.000000e+00 : f32
    %4 = vector.broadcast %cst : f32 to vector<8x8xf32>
    %5 = arith.cmpf oeq, %3, %4 : vector<8x8xf32>
    %cst_5 = arith.constant -1.000000e+09 : f32
    %cst_6 = arith.constant 0.000000e+00 : f32
    %6 = vector.broadcast %cst_5 : f32 to vector<8x8xf32>
    %7 = vector.broadcast %cst_6 : f32 to vector<8x8xf32>
    %8 = arith.select %5, %6, %7 : vector<8x8xi1>, vector<8x8xf32>
    %c0_7 = arith.constant 0 : index
    %c0_8 = arith.constant 0 : index
    %c0_9 = arith.constant 0 : index
    %9 = vector.load %arg4[%c0_7, %c0_8, %c0_9] : memref<1x1x16xf32, #tpu.memory_space<vmem>>, vector<1x1x16xf32>
    %10 = vector.shape_cast %9 : vector<1x1x16xf32> to vector<1x16xf32>
    %cst_10 = arith.constant 0.000000e+00 : f32
    %11 = vector.broadcast %cst_10 : f32 to vector<1x16xf32>
    %12 = arith.cmpf oeq, %10, %11 : vector<1x16xf32>
    %cst_11 = arith.constant -1.000000e+09 : f32
    %cst_12 = arith.constant 0.000000e+00 : f32
    %13 = vector.broadcast %cst_11 : f32 to vector<1x16xf32>
    %14 = vector.broadcast %cst_12 : f32 to vector<1x16xf32>
    %15 = arith.select %12, %13, %14 : vector<1x16xi1>, vector<1x16xf32>
    %c0_13 = arith.constant 0 : index
    %c0_14 = arith.constant 0 : index
    %16 = vector.load %arg5[%c0_13, %c0_14] : memref<1x32xf32, #tpu.memory_space<vmem>>, vector<1x32xf32>
    %17 = vector.shape_cast %16 : vector<1x32xf32> to vector<32xf32>
    %c0_15 = arith.constant 0 : index
    %c0_16 = arith.constant 0 : index
    %18 = vector.load %arg6[%c0_15, %c0_16] : memref<1x32xf32, #tpu.memory_space<vmem>>, vector<1x32xf32>
    %19 = vector.shape_cast %18 : vector<1x32xf32> to vector<32xf32>
    %cst_17 = arith.constant dense<0.000000e+00> : vector<8xf32>
    %20 = vector.multi_reduction <add>, %1, %cst_17 [1] : vector<8x32xf32> to vector<8xf32>
    %21 = vector.shape_cast %20 : vector<8xf32> to vector<8x1xf32>
    %cst_18 = arith.constant 3.200000e+01 : f32
    %22 = vector.broadcast %cst_18 : f32 to vector<8x1xf32>
    %23 = arith.divf %21, %22 : vector<8x1xf32>
    %24 = vector.broadcast %23 : vector<8x1xf32> to vector<8x32xf32>
    %25 = arith.subf %1, %24 : vector<8x32xf32>
    %26 = arith.mulf %25, %25 : vector<8x32xf32>
    %cst_19 = arith.constant dense<0.000000e+00> : vector<8xf32>
    %27 = vector.multi_reduction <add>, %26, %cst_19 [1] : vector<8x32xf32> to vector<8xf32>
    %28 = vector.shape_cast %27 : vector<8xf32> to vector<8x1xf32>
    %cst_20 = arith.constant 3.100000e+01 : f32
    %29 = vector.broadcast %cst_20 : f32 to vector<8x1xf32>
    %30 = arith.divf %28, %29 : vector<8x1xf32>
    %31 = math.sqrt %30 : vector<8x1xf32>
    %cst_21 = arith.constant 9.99999997E-7 : f32
    %32 = vector.broadcast %cst_21 : f32 to vector<8x1xf32>
    %33 = arith.addf %31, %32 : vector<8x1xf32>
    %34 = tpu.reciprocal %33 {approx = true} : vector<8x1xf32> -> vector<8x1xf32>
    %35 = vector.broadcast %23 : vector<8x1xf32> to vector<8x32xf32>
    %36 = arith.subf %1, %35 : vector<8x32xf32>
    %37 = vector.shape_cast %17 : vector<32xf32> to vector<1x32xf32>
    %38 = vector.broadcast %37 : vector<1x32xf32> to vector<8x32xf32>
    %39 = arith.mulf %38, %36 : vector<8x32xf32>
    %40 = vector.broadcast %34 : vector<8x1xf32> to vector<8x32xf32>
    %41 = arith.mulf %39, %40 : vector<8x32xf32>
    %42 = vector.shape_cast %19 : vector<32xf32> to vector<1x32xf32>
    %43 = vector.broadcast %42 : vector<1x32xf32> to vector<8x32xf32>
    %44 = arith.addf %41, %43 : vector<8x32xf32>
    %45 = arith.truncf %44 : vector<8x32xf32> to vector<8x32xbf16>
    %c0_22 = arith.constant 0 : index
    %c0_23 = arith.constant 0 : index
    %46 = vector.load %arg7[%c0_22, %c0_23] : memref<32x96xbf16, #tpu.memory_space<vmem>>, vector<32x96xbf16>
    %cst_24 = arith.constant dense<0.000000e+00> : vector<8x96xf32>
    %47 = tpu.matmul %45, %46, %cst_24 {dimension_numbers = #tpu.dot_dimension_numbers<[1], [0], [0], [1], [0, 0, 1, 1], [], []>} : vector<8x32xbf16>, vector<32x96xbf16>, vector<8x96xf32> -> vector<8x96xf32>
    %c0_25 = arith.constant 0 : index
    %c0_26 = arith.constant 0 : index
    %48 = vector.load %arg8[%c0_25, %c0_26] : memref<1x96xf32, #tpu.memory_space<vmem>>, vector<1x96xf32>
    %49 = vector.shape_cast %48 : vector<1x96xf32> to vector<96xf32>
    %50 = vector.shape_cast %49 : vector<96xf32> to vector<1x96xf32>
    %51 = vector.broadcast %50 : vector<1x96xf32> to vector<8x96xf32>
    %52 = arith.addf %47, %51 : vector<8x96xf32>
    %53 = vector.extract_strided_slice %52 {offsets = [0, 0], sizes = [8, 32], strides = [1, 1]} : vector<8x96xf32> to vector<8x32xf32>
    %54 = vector.extract_strided_slice %52 {offsets = [0, 32], sizes = [8, 32], strides = [1, 1]} : vector<8x96xf32> to vector<8x32xf32>
    %55 = vector.extract_strided_slice %52 {offsets = [0, 64], sizes = [8, 32], strides = [1, 1]} : vector<8x96xf32> to vector<8x32xf32>
    %cst_27 = arith.constant 0.353553385 : f32
    %56 = vector.broadcast %cst_27 : f32 to vector<8x32xf32>
    %57 = arith.mulf %53, %56 : vector<8x32xf32>
    %58 = vector.extract_strided_slice %57 {offsets = [0, 0], sizes = [8, 8], strides = [1, 1]} : vector<8x32xf32> to vector<8x8xf32>
    %59 = vector.extract_strided_slice %57 {offsets = [0, 8], sizes = [8, 8], strides = [1, 1]} : vector<8x32xf32> to vector<8x8xf32>
    %60 = vector.extract_strided_slice %57 {offsets = [0, 16], sizes = [8, 8], strides = [1, 1]} : vector<8x32xf32> to vector<8x8xf32>
    %61 = vector.extract_strided_slice %57 {offsets = [0, 24], sizes = [8, 8], strides = [1, 1]} : vector<8x32xf32> to vector<8x8xf32>
    %62 = vector.shape_cast %58 : vector<8x8xf32> to vector<1x8x8xf32>
    %63 = vector.shape_cast %59 : vector<8x8xf32> to vector<1x8x8xf32>
    %64 = vector.shape_cast %60 : vector<8x8xf32> to vector<1x8x8xf32>
    %65 = vector.shape_cast %61 : vector<8x8xf32> to vector<1x8x8xf32>
    %66 = tpu.concatenate %62, %63, %64, %65 in 0 : vector<1x8x8xf32>, vector<1x8x8xf32>, vector<1x8x8xf32>, vector<1x8x8xf32> -> vector<4x8x8xf32>
    %67 = arith.truncf %66 : vector<4x8x8xf32> to vector<4x8x8xbf16>
    %68 = vector.extract_strided_slice %54 {offsets = [0, 0], sizes = [8, 8], strides = [1, 1]} : vector<8x32xf32> to vector<8x8xf32>
    %69 = vector.extract_strided_slice %54 {offsets = [0, 8], sizes = [8, 8], strides = [1, 1]} : vector<8x32xf32> to vector<8x8xf32>
    %70 = vector.extract_strided_slice %54 {offsets = [0, 16], sizes = [8, 8], strides = [1, 1]} : vector<8x32xf32> to vector<8x8xf32>
    %71 = vector.extract_strided_slice %54 {offsets = [0, 24], sizes = [8, 8], strides = [1, 1]} : vector<8x32xf32> to vector<8x8xf32>
    %72 = vector.shape_cast %68 : vector<8x8xf32> to vector<1x8x8xf32>
    %73 = vector.shape_cast %69 : vector<8x8xf32> to vector<1x8x8xf32>
    %74 = vector.shape_cast %70 : vector<8x8xf32> to vector<1x8x8xf32>
    %75 = vector.shape_cast %71 : vector<8x8xf32> to vector<1x8x8xf32>
    %76 = tpu.concatenate %72, %73, %74, %75 in 0 : vector<1x8x8xf32>, vector<1x8x8xf32>, vector<1x8x8xf32>, vector<1x8x8xf32> -> vector<4x8x8xf32>
    %77 = arith.truncf %76 : vector<4x8x8xf32> to vector<4x8x8xbf16>
    %78 = vector.extract_strided_slice %55 {offsets = [0, 0], sizes = [8, 8], strides = [1, 1]} : vector<8x32xf32> to vector<8x8xf32>
    %79 = vector.extract_strided_slice %55 {offsets = [0, 8], sizes = [8, 8], strides = [1, 1]} : vector<8x32xf32> to vector<8x8xf32>
    %80 = vector.extract_strided_slice %55 {offsets = [0, 16], sizes = [8, 8], strides = [1, 1]} : vector<8x32xf32> to vector<8x8xf32>
    %81 = vector.extract_strided_slice %55 {offsets = [0, 24], sizes = [8, 8], strides = [1, 1]} : vector<8x32xf32> to vector<8x8xf32>
    %82 = vector.shape_cast %78 : vector<8x8xf32> to vector<1x8x8xf32>
    %83 = vector.shape_cast %79 : vector<8x8xf32> to vector<1x8x8xf32>
    %84 = vector.shape_cast %80 : vector<8x8xf32> to vector<1x8x8xf32>
    %85 = vector.shape_cast %81 : vector<8x8xf32> to vector<1x8x8xf32>
    %86 = tpu.concatenate %82, %83, %84, %85 in 0 : vector<1x8x8xf32>, vector<1x8x8xf32>, vector<1x8x8xf32>, vector<1x8x8xf32> -> vector<4x8x8xf32>
    %87 = arith.truncf %86 : vector<4x8x8xf32> to vector<4x8x8xbf16>
    "tpu.trace_start"() <{level = 10 : i32, message = "hqd,hkd->hqk"}> : () -> ()
    %cst_28 = arith.constant dense<0.000000e+00> : vector<4x8x8xf32>
    %88 = tpu.matmul %67, %77, %cst_28 {dimension_numbers = #tpu.dot_dimension_numbers<[2], [2], [1], [1], [0, 0, 0, 1, 1, 1], [0], [0]>} : vector<4x8x8xbf16>, vector<4x8x8xbf16>, vector<4x8x8xf32> -> vector<4x8x8xf32>
    "tpu.trace_stop"() : () -> ()
    %89 = vector.shape_cast %8 : vector<8x8xf32> to vector<1x8x8xf32>
    %90 = vector.broadcast %89 : vector<1x8x8xf32> to vector<4x8x8xf32>
    %91 = arith.addf %88, %90 : vector<4x8x8xf32>
    %cst_29 = arith.constant dense<0xFF800000> : vector<4x8xf32>
    %92 = vector.multi_reduction <maximumf>, %91, %cst_29 [2] : vector<4x8x8xf32> to vector<4x8xf32>
    %93 = vector.shape_cast %92 : vector<4x8xf32> to vector<4x8x1xf32>
    %94 = vector.broadcast %93 : vector<4x8x1xf32> to vector<4x8x8xf32>
    %95 = arith.subf %91, %94 : vector<4x8x8xf32>
    %96 = math.exp %95 : vector<4x8x8xf32>
    %cst_30 = arith.constant dense<0.000000e+00> : vector<4x8xf32>
    %97 = vector.multi_reduction <add>, %96, %cst_30 [2] : vector<4x8x8xf32> to vector<4x8xf32>
    %98 = vector.shape_cast %97 : vector<4x8xf32> to vector<4x8x1xf32>
    %99 = tpu.reciprocal %98 {approx = true} : vector<4x8x1xf32> -> vector<4x8x1xf32>
    %100 = vector.broadcast %99 : vector<4x8x1xf32> to vector<4x8x8xf32>
    %101 = arith.mulf %96, %100 : vector<4x8x8xf32>
    %102 = arith.truncf %101 : vector<4x8x8xf32> to vector<4x8x8xbf16>
    "tpu.trace_start"() <{level = 10 : i32, message = "hqk,hkd->hqd"}> : () -> ()
    %cst_31 = arith.constant dense<0.000000e+00> : vector<4x8x8xf32>
    %103 = tpu.matmul %102, %87, %cst_31 {dimension_numbers = #tpu.dot_dimension_numbers<[2], [1], [1], [2], [0, 0, 0, 1, 1, 2], [0], [0]>} : vector<4x8x8xbf16>, vector<4x8x8xbf16>, vector<4x8x8xf32> -> vector<4x8x8xf32>
    "tpu.trace_stop"() : () -> ()
    %104 = arith.truncf %103 : vector<4x8x8xf32> to vector<4x8x8xbf16>
    %c0_32 = arith.constant 0 : index
    %c0_33 = arith.constant 0 : index
    %c0_34 = arith.constant 0 : index
    %105 = vector.load %arg9[%c0_32, %c0_33, %c0_34] : memref<4x8x32xbf16, #tpu.memory_space<vmem>>, vector<4x8x32xbf16>
    "tpu.trace_start"() <{level = 10 : i32, message = "hqd,hde->hqe"}> : () -> ()
    %cst_35 = arith.constant dense<0.000000e+00> : vector<4x8x32xf32>
    %106 = tpu.matmul %104, %105, %cst_35 {dimension_numbers = #tpu.dot_dimension_numbers<[2], [1], [1], [2], [0, 0, 0, 1, 1, 2], [0], [0]>} : vector<4x8x8xbf16>, vector<4x8x32xbf16>, vector<4x8x32xf32> -> vector<4x8x32xf32>
    "tpu.trace_stop"() : () -> ()
    %cst_36 = arith.constant dense<0.000000e+00> : vector<8x32xf32>
    %107 = vector.multi_reduction <add>, %106, %cst_36 [0] : vector<4x8x32xf32> to vector<8x32xf32>
    %c0_37 = arith.constant 0 : index
    %c0_38 = arith.constant 0 : index
    %108 = vector.load %arg10[%c0_37, %c0_38] : memref<1x32xf32, #tpu.memory_space<vmem>>, vector<1x32xf32>
    %109 = vector.shape_cast %108 : vector<1x32xf32> to vector<32xf32>
    %110 = vector.shape_cast %109 : vector<32xf32> to vector<1x32xf32>
    %111 = vector.broadcast %110 : vector<1x32xf32> to vector<8x32xf32>
    %112 = arith.addf %107, %111 : vector<8x32xf32>
    %113 = arith.addf %1, %112 : vector<8x32xf32>
    %c0_39 = arith.constant 0 : index
    %c0_40 = arith.constant 0 : index
    %c0_41 = arith.constant 0 : index
    %114 = vector.load %arg2[%c0_39, %c0_40, %c0_41] : memref<1x16x32xf32, #tpu.memory_space<vmem>>, vector<1x16x32xf32>
    %115 = vector.shape_cast %114 : vector<1x16x32xf32> to vector<16x32xf32>
    %116 = arith.truncf %115 : vector<16x32xf32> to vector<16x32xbf16>
    %c0_42 = arith.constant 0 : index
    %c0_43 = arith.constant 0 : index
    %117 = vector.load %arg11[%c0_42, %c0_43] : memref<1x32xf32, #tpu.memory_space<vmem>>, vector<1x32xf32>
    %118 = vector.shape_cast %117 : vector<1x32xf32> to vector<32xf32>
    %c0_44 = arith.constant 0 : index
    %c0_45 = arith.constant 0 : index
    %119 = vector.load %arg12[%c0_44, %c0_45] : memref<1x32xf32, #tpu.memory_space<vmem>>, vector<1x32xf32>
    %120 = vector.shape_cast %119 : vector<1x32xf32> to vector<32xf32>
    %cst_46 = arith.constant dense<0.000000e+00> : vector<8xf32>
    %121 = vector.multi_reduction <add>, %113, %cst_46 [1] : vector<8x32xf32> to vector<8xf32>
    %122 = vector.shape_cast %121 : vector<8xf32> to vector<8x1xf32>
    %cst_47 = arith.constant 3.200000e+01 : f32
    %123 = vector.broadcast %cst_47 : f32 to vector<8x1xf32>
    %124 = arith.divf %122, %123 : vector<8x1xf32>
    %125 = vector.broadcast %124 : vector<8x1xf32> to vector<8x32xf32>
    %126 = arith.subf %113, %125 : vector<8x32xf32>
    %127 = arith.mulf %126, %126 : vector<8x32xf32>
    %cst_48 = arith.constant dense<0.000000e+00> : vector<8xf32>
    %128 = vector.multi_reduction <add>, %127, %cst_48 [1] : vector<8x32xf32> to vector<8xf32>
    %129 = vector.shape_cast %128 : vector<8xf32> to vector<8x1xf32>
    %cst_49 = arith.constant 3.100000e+01 : f32
    %130 = vector.broadcast %cst_49 : f32 to vector<8x1xf32>
    %131 = arith.divf %129, %130 : vector<8x1xf32>
    %132 = math.sqrt %131 : vector<8x1xf32>
    %cst_50 = arith.constant 9.99999997E-7 : f32
    %133 = vector.broadcast %cst_50 : f32 to vector<8x1xf32>
    %134 = arith.addf %132, %133 : vector<8x1xf32>
    %135 = tpu.reciprocal %134 {approx = true} : vector<8x1xf32> -> vector<8x1xf32>
    %136 = vector.broadcast %124 : vector<8x1xf32> to vector<8x32xf32>
    %137 = arith.subf %113, %136 : vector<8x32xf32>
    %138 = vector.shape_cast %118 : vector<32xf32> to vector<1x32xf32>
    %139 = vector.broadcast %138 : vector<1x32xf32> to vector<8x32xf32>
    %140 = arith.mulf %139, %137 : vector<8x32xf32>
    %141 = vector.broadcast %135 : vector<8x1xf32> to vector<8x32xf32>
    %142 = arith.mulf %140, %141 : vector<8x32xf32>
    %143 = vector.shape_cast %120 : vector<32xf32> to vector<1x32xf32>
    %144 = vector.broadcast %143 : vector<1x32xf32> to vector<8x32xf32>
    %145 = arith.addf %142, %144 : vector<8x32xf32>
    %146 = arith.truncf %145 : vector<8x32xf32> to vector<8x32xbf16>
    %c0_51 = arith.constant 0 : index
    %c0_52 = arith.constant 0 : index
    %147 = vector.load %arg13[%c0_51, %c0_52] : memref<32x32xbf16, #tpu.memory_space<vmem>>, vector<32x32xbf16>
    %cst_53 = arith.constant dense<0.000000e+00> : vector<8x32xf32>
    %148 = tpu.matmul %146, %147, %cst_53 {dimension_numbers = #tpu.dot_dimension_numbers<[1], [0], [0], [1], [0, 0, 1, 1], [], []>} : vector<8x32xbf16>, vector<32x32xbf16>, vector<8x32xf32> -> vector<8x32xf32>
    %c0_54 = arith.constant 0 : index
    %c0_55 = arith.constant 0 : index
    %149 = vector.load %arg14[%c0_54, %c0_55] : memref<1x32xf32, #tpu.memory_space<vmem>>, vector<1x32xf32>
    %150 = vector.shape_cast %149 : vector<1x32xf32> to vector<32xf32>
    %151 = vector.shape_cast %150 : vector<32xf32> to vector<1x32xf32>
    %152 = vector.broadcast %151 : vector<1x32xf32> to vector<8x32xf32>
    %153 = arith.addf %148, %152 : vector<8x32xf32>
    %c0_56 = arith.constant 0 : index
    %c0_57 = arith.constant 0 : index
    %154 = vector.load %arg15[%c0_56, %c0_57] : memref<32x64xbf16, #tpu.memory_space<vmem>>, vector<32x64xbf16>
    %cst_58 = arith.constant dense<0.000000e+00> : vector<16x64xf32>
    %155 = tpu.matmul %116, %154, %cst_58 {dimension_numbers = #tpu.dot_dimension_numbers<[1], [0], [0], [1], [0, 0, 1, 1], [], []>} : vector<16x32xbf16>, vector<32x64xbf16>, vector<16x64xf32> -> vector<16x64xf32>
    %c0_59 = arith.constant 0 : index
    %c0_60 = arith.constant 0 : index
    %156 = vector.load %arg16[%c0_59, %c0_60] : memref<1x64xf32, #tpu.memory_space<vmem>>, vector<1x64xf32>
    %157 = vector.shape_cast %156 : vector<1x64xf32> to vector<64xf32>
    %158 = vector.shape_cast %157 : vector<64xf32> to vector<1x64xf32>
    %159 = vector.broadcast %158 : vector<1x64xf32> to vector<16x64xf32>
    %160 = arith.addf %155, %159 : vector<16x64xf32>
    %161 = vector.extract_strided_slice %160 {offsets = [0, 0], sizes = [16, 32], strides = [1, 1]} : vector<16x64xf32> to vector<16x32xf32>
    %162 = vector.extract_strided_slice %160 {offsets = [0, 32], sizes = [16, 32], strides = [1, 1]} : vector<16x64xf32> to vector<16x32xf32>
    %cst_61 = arith.constant 0.353553385 : f32
    %163 = vector.broadcast %cst_61 : f32 to vector<8x32xf32>
    %164 = arith.mulf %153, %163 : vector<8x32xf32>
    %165 = vector.extract_strided_slice %164 {offsets = [0, 0], sizes = [8, 8], strides = [1, 1]} : vector<8x32xf32> to vector<8x8xf32>
    %166 = vector.extract_strided_slice %164 {offsets = [0, 8], sizes = [8, 8], strides = [1, 1]} : vector<8x32xf32> to vector<8x8xf32>
    %167 = vector.extract_strided_slice %164 {offsets = [0, 16], sizes = [8, 8], strides = [1, 1]} : vector<8x32xf32> to vector<8x8xf32>
    %168 = vector.extract_strided_slice %164 {offsets = [0, 24], sizes = [8, 8], strides = [1, 1]} : vector<8x32xf32> to vector<8x8xf32>
    %169 = vector.shape_cast %165 : vector<8x8xf32> to vector<1x8x8xf32>
    %170 = vector.shape_cast %166 : vector<8x8xf32> to vector<1x8x8xf32>
    %171 = vector.shape_cast %167 : vector<8x8xf32> to vector<1x8x8xf32>
    %172 = vector.shape_cast %168 : vector<8x8xf32> to vector<1x8x8xf32>
    %173 = tpu.concatenate %169, %170, %171, %172 in 0 : vector<1x8x8xf32>, vector<1x8x8xf32>, vector<1x8x8xf32>, vector<1x8x8xf32> -> vector<4x8x8xf32>
    %174 = arith.truncf %173 : vector<4x8x8xf32> to vector<4x8x8xbf16>
    %175 = vector.extract_strided_slice %161 {offsets = [0, 0], sizes = [16, 8], strides = [1, 1]} : vector<16x32xf32> to vector<16x8xf32>
    %176 = vector.extract_strided_slice %161 {offsets = [0, 8], sizes = [16, 8], strides = [1, 1]} : vector<16x32xf32> to vector<16x8xf32>
    %177 = vector.extract_strided_slice %161 {offsets = [0, 16], sizes = [16, 8], strides = [1, 1]} : vector<16x32xf32> to vector<16x8xf32>
    %178 = vector.extract_strided_slice %161 {offsets = [0, 24], sizes = [16, 8], strides = [1, 1]} : vector<16x32xf32> to vector<16x8xf32>
    %179 = vector.shape_cast %175 : vector<16x8xf32> to vector<1x16x8xf32>
    %180 = vector.shape_cast %176 : vector<16x8xf32> to vector<1x16x8xf32>
    %181 = vector.shape_cast %177 : vector<16x8xf32> to vector<1x16x8xf32>
    %182 = vector.shape_cast %178 : vector<16x8xf32> to vector<1x16x8xf32>
    %183 = tpu.concatenate %179, %180, %181, %182 in 0 : vector<1x16x8xf32>, vector<1x16x8xf32>, vector<1x16x8xf32>, vector<1x16x8xf32> -> vector<4x16x8xf32>
    %184 = arith.truncf %183 : vector<4x16x8xf32> to vector<4x16x8xbf16>
    %185 = vector.extract_strided_slice %162 {offsets = [0, 0], sizes = [16, 8], strides = [1, 1]} : vector<16x32xf32> to vector<16x8xf32>
    %186 = vector.extract_strided_slice %162 {offsets = [0, 8], sizes = [16, 8], strides = [1, 1]} : vector<16x32xf32> to vector<16x8xf32>
    %187 = vector.extract_strided_slice %162 {offsets = [0, 16], sizes = [16, 8], strides = [1, 1]} : vector<16x32xf32> to vector<16x8xf32>
    %188 = vector.extract_strided_slice %162 {offsets = [0, 24], sizes = [16, 8], strides = [1, 1]} : vector<16x32xf32> to vector<16x8xf32>
    %189 = vector.shape_cast %185 : vector<16x8xf32> to vector<1x16x8xf32>
    %190 = vector.shape_cast %186 : vector<16x8xf32> to vector<1x16x8xf32>
    %191 = vector.shape_cast %187 : vector<16x8xf32> to vector<1x16x8xf32>
    %192 = vector.shape_cast %188 : vector<16x8xf32> to vector<1x16x8xf32>
    %193 = tpu.concatenate %189, %190, %191, %192 in 0 : vector<1x16x8xf32>, vector<1x16x8xf32>, vector<1x16x8xf32>, vector<1x16x8xf32> -> vector<4x16x8xf32>
    %194 = arith.truncf %193 : vector<4x16x8xf32> to vector<4x16x8xbf16>
    "tpu.trace_start"() <{level = 10 : i32, message = "hqd,hkd->hqk"}> : () -> ()
    %cst_62 = arith.constant dense<0.000000e+00> : vector<4x8x16xf32>
    %195 = tpu.matmul %174, %184, %cst_62 {dimension_numbers = #tpu.dot_dimension_numbers<[2], [2], [1], [1], [0, 0, 0, 1, 1, 1], [0], [0]>} : vector<4x8x8xbf16>, vector<4x16x8xbf16>, vector<4x8x16xf32> -> vector<4x8x16xf32>
    "tpu.trace_stop"() : () -> ()
    %196 = vector.shape_cast %15 : vector<1x16xf32> to vector<1x1x16xf32>
    %197 = vector.broadcast %196 : vector<1x1x16xf32> to vector<4x8x16xf32>
    %198 = arith.addf %195, %197 : vector<4x8x16xf32>
    %cst_63 = arith.constant dense<0xFF800000> : vector<4x8xf32>
    %199 = vector.multi_reduction <maximumf>, %198, %cst_63 [2] : vector<4x8x16xf32> to vector<4x8xf32>
    %200 = vector.shape_cast %199 : vector<4x8xf32> to vector<4x8x1xf32>
    %201 = vector.broadcast %200 : vector<4x8x1xf32> to vector<4x8x16xf32>
    %202 = arith.subf %198, %201 : vector<4x8x16xf32>
    %203 = math.exp %202 : vector<4x8x16xf32>
    %cst_64 = arith.constant dense<0.000000e+00> : vector<4x8xf32>
    %204 = vector.multi_reduction <add>, %203, %cst_64 [2] : vector<4x8x16xf32> to vector<4x8xf32>
    %205 = vector.shape_cast %204 : vector<4x8xf32> to vector<4x8x1xf32>
    %206 = tpu.reciprocal %205 {approx = true} : vector<4x8x1xf32> -> vector<4x8x1xf32>
    %207 = vector.broadcast %206 : vector<4x8x1xf32> to vector<4x8x16xf32>
    %208 = arith.mulf %203, %207 : vector<4x8x16xf32>
    %209 = arith.truncf %208 : vector<4x8x16xf32> to vector<4x8x16xbf16>
    "tpu.trace_start"() <{level = 10 : i32, message = "hqk,hkd->hqd"}> : () -> ()
    %cst_65 = arith.constant dense<0.000000e+00> : vector<4x8x8xf32>
    %210 = tpu.matmul %209, %194, %cst_65 {dimension_numbers = #tpu.dot_dimension_numbers<[2], [1], [1], [2], [0, 0, 0, 1, 1, 2], [0], [0]>} : vector<4x8x16xbf16>, vector<4x16x8xbf16>, vector<4x8x8xf32> -> vector<4x8x8xf32>
    "tpu.trace_stop"() : () -> ()
    %211 = arith.truncf %210 : vector<4x8x8xf32> to vector<4x8x8xbf16>
    %c0_66 = arith.constant 0 : index
    %c0_67 = arith.constant 0 : index
    %c0_68 = arith.constant 0 : index
    %212 = vector.load %arg17[%c0_66, %c0_67, %c0_68] : memref<4x8x32xbf16, #tpu.memory_space<vmem>>, vector<4x8x32xbf16>
    "tpu.trace_start"() <{level = 10 : i32, message = "hqd,hde->hqe"}> : () -> ()
    %cst_69 = arith.constant dense<0.000000e+00> : vector<4x8x32xf32>
    %213 = tpu.matmul %211, %212, %cst_69 {dimension_numbers = #tpu.dot_dimension_numbers<[2], [1], [1], [2], [0, 0, 0, 1, 1, 2], [0], [0]>} : vector<4x8x8xbf16>, vector<4x8x32xbf16>, vector<4x8x32xf32> -> vector<4x8x32xf32>
    "tpu.trace_stop"() : () -> ()
    %cst_70 = arith.constant dense<0.000000e+00> : vector<8x32xf32>
    %214 = vector.multi_reduction <add>, %213, %cst_70 [0] : vector<4x8x32xf32> to vector<8x32xf32>
    %c0_71 = arith.constant 0 : index
    %c0_72 = arith.constant 0 : index
    %215 = vector.load %arg18[%c0_71, %c0_72] : memref<1x32xf32, #tpu.memory_space<vmem>>, vector<1x32xf32>
    %216 = vector.shape_cast %215 : vector<1x32xf32> to vector<32xf32>
    %217 = vector.shape_cast %216 : vector<32xf32> to vector<1x32xf32>
    %218 = vector.broadcast %217 : vector<1x32xf32> to vector<8x32xf32>
    %219 = arith.addf %214, %218 : vector<8x32xf32>
    %220 = arith.addf %113, %219 : vector<8x32xf32>
    %c0_73 = arith.constant 0 : index
    %c0_74 = arith.constant 0 : index
    %221 = vector.load %arg19[%c0_73, %c0_74] : memref<1x32xf32, #tpu.memory_space<vmem>>, vector<1x32xf32>
    %222 = vector.shape_cast %221 : vector<1x32xf32> to vector<32xf32>
    %c0_75 = arith.constant 0 : index
    %c0_76 = arith.constant 0 : index
    %223 = vector.load %arg20[%c0_75, %c0_76] : memref<1x32xf32, #tpu.memory_space<vmem>>, vector<1x32xf32>
    %224 = vector.shape_cast %223 : vector<1x32xf32> to vector<32xf32>
    %cst_77 = arith.constant dense<0.000000e+00> : vector<8xf32>
    %225 = vector.multi_reduction <add>, %220, %cst_77 [1] : vector<8x32xf32> to vector<8xf32>
    %226 = vector.shape_cast %225 : vector<8xf32> to vector<8x1xf32>
    %cst_78 = arith.constant 3.200000e+01 : f32
    %227 = vector.broadcast %cst_78 : f32 to vector<8x1xf32>
    %228 = arith.divf %226, %227 : vector<8x1xf32>
    %229 = vector.broadcast %228 : vector<8x1xf32> to vector<8x32xf32>
    %230 = arith.subf %220, %229 : vector<8x32xf32>
    %231 = arith.mulf %230, %230 : vector<8x32xf32>
    %cst_79 = arith.constant dense<0.000000e+00> : vector<8xf32>
    %232 = vector.multi_reduction <add>, %231, %cst_79 [1] : vector<8x32xf32> to vector<8xf32>
    %233 = vector.shape_cast %232 : vector<8xf32> to vector<8x1xf32>
    %cst_80 = arith.constant 3.100000e+01 : f32
    %234 = vector.broadcast %cst_80 : f32 to vector<8x1xf32>
    %235 = arith.divf %233, %234 : vector<8x1xf32>
    %236 = math.sqrt %235 : vector<8x1xf32>
    %cst_81 = arith.constant 9.99999997E-7 : f32
    %237 = vector.broadcast %cst_81 : f32 to vector<8x1xf32>
    %238 = arith.addf %236, %237 : vector<8x1xf32>
    %239 = tpu.reciprocal %238 {approx = true} : vector<8x1xf32> -> vector<8x1xf32>
    %240 = vector.broadcast %228 : vector<8x1xf32> to vector<8x32xf32>
    %241 = arith.subf %220, %240 : vector<8x32xf32>
    %242 = vector.shape_cast %222 : vector<32xf32> to vector<1x32xf32>
    %243 = vector.broadcast %242 : vector<1x32xf32> to vector<8x32xf32>
    %244 = arith.mulf %243, %241 : vector<8x32xf32>
    %245 = vector.broadcast %239 : vector<8x1xf32> to vector<8x32xf32>
    %246 = arith.mulf %244, %245 : vector<8x32xf32>
    %247 = vector.shape_cast %224 : vector<32xf32> to vector<1x32xf32>
    %248 = vector.broadcast %247 : vector<1x32xf32> to vector<8x32xf32>
    %249 = arith.addf %246, %248 : vector<8x32xf32>
    %250 = arith.truncf %249 : vector<8x32xf32> to vector<8x32xbf16>
    %c0_82 = arith.constant 0 : index
    %c0_83 = arith.constant 0 : index
    %251 = vector.load %arg21[%c0_82, %c0_83] : memref<32x2048xbf16, #tpu.memory_space<vmem>>, vector<32x2048xbf16>
    %cst_84 = arith.constant dense<0.000000e+00> : vector<8x2048xf32>
    %252 = tpu.matmul %250, %251, %cst_84 {dimension_numbers = #tpu.dot_dimension_numbers<[1], [0], [0], [1], [0, 0, 1, 1], [], []>} : vector<8x32xbf16>, vector<32x2048xbf16>, vector<8x2048xf32> -> vector<8x2048xf32>
    %c0_85 = arith.constant 0 : index
    %c0_86 = arith.constant 0 : index
    %253 = vector.load %arg22[%c0_85, %c0_86] : memref<1x2048xf32, #tpu.memory_space<vmem>>, vector<1x2048xf32>
    %254 = vector.shape_cast %253 : vector<1x2048xf32> to vector<2048xf32>
    %255 = vector.shape_cast %254 : vector<2048xf32> to vector<1x2048xf32>
    %256 = vector.broadcast %255 : vector<1x2048xf32> to vector<8x2048xf32>
    %257 = arith.addf %252, %256 : vector<8x2048xf32>
    %cst_87 = arith.constant 0.000000e+00 : f32
    %258 = vector.broadcast %cst_87 : f32 to vector<8x2048xf32>
    %259 = arith.maximumf %257, %258 : vector<8x2048xf32>
    %260 = arith.truncf %259 : vector<8x2048xf32> to vector<8x2048xbf16>
    %c0_88 = arith.constant 0 : index
    %c0_89 = arith.constant 0 : index
    %261 = vector.load %arg23[%c0_88, %c0_89] : memref<2048x32xbf16, #tpu.memory_space<vmem>>, vector<2048x32xbf16>
    %cst_90 = arith.constant dense<0.000000e+00> : vector<8x32xf32>
    %262 = tpu.matmul %260, %261, %cst_90 {dimension_numbers = #tpu.dot_dimension_numbers<[1], [0], [0], [1], [0, 0, 1, 1], [], []>} : vector<8x2048xbf16>, vector<2048x32xbf16>, vector<8x32xf32> -> vector<8x32xf32>
    %c0_91 = arith.constant 0 : index
    %c0_92 = arith.constant 0 : index
    %263 = vector.load %arg24[%c0_91, %c0_92] : memref<1x32xf32, #tpu.memory_space<vmem>>, vector<1x32xf32>
    %264 = vector.shape_cast %263 : vector<1x32xf32> to vector<32xf32>
    %265 = vector.shape_cast %264 : vector<32xf32> to vector<1x32xf32>
    %266 = vector.broadcast %265 : vector<1x32xf32> to vector<8x32xf32>
    %267 = arith.addf %262, %266 : vector<8x32xf32>
    %268 = arith.addf %220, %267 : vector<8x32xf32>
    %c0_93 = arith.constant 0 : index
    %c0_94 = arith.constant 0 : index
    %c0_95 = arith.constant 0 : index
    %269 = vector.load %arg25[%c0_93, %c0_94, %c0_95] : memref<1x8x32xf32, #tpu.memory_space<vmem>>, vector<1x8x32xf32>
    %270 = vector.shape_cast %269 : vector<1x8x32xf32> to vector<8x32xf32>
    %271 = vector.shape_cast %268 : vector<8x32xf32> to vector<1x8x32xf32>
    tpu.vector_store %arg25[%c0_93, %c0_94, %c0_95], %271 {strides = array<i32>} : memref<1x8x32xf32, #tpu.memory_space<vmem>>, vector<1x8x32xf32>,
    return
  }
  func.func @transform_0(%arg0: i32) -> (i32, i32, i32) {
    %c0_i32 = arith.constant 0 : i32
    %c0_i32_0 = arith.constant 0 : i32
    %c0_i32_1 = arith.constant 0 : i32
    return %arg0, %c0_i32, %c0_i32_0 : i32, i32, i32
  }
  func.func @transform_1(%arg0: i32) -> (i32, i32, i32) {
    %c0_i32 = arith.constant 0 : i32
    %c0_i32_0 = arith.constant 0 : i32
    %c0_i32_1 = arith.constant 0 : i32
    return %arg0, %c0_i32, %c0_i32_0 : i32, i32, i32
  }
  func.func @transform_2(%arg0: i32) -> (i32, i32, i32) {
    %c0_i32 = arith.constant 0 : i32
    %c0_i32_0 = arith.constant 0 : i32
    %c0_i32_1 = arith.constant 0 : i32
    return %arg0, %c0_i32, %c0_i32_0 : i32, i32, i32
  }
  func.func @transform_3(%arg0: i32) -> (i32, i32, i32) {
    %c0_i32 = arith.constant 0 : i32
    %c0_i32_0 = arith.constant 0 : i32
    %c0_i32_1 = arith.constant 0 : i32
    return %arg0, %c0_i32, %c0_i32_0 : i32, i32, i32
  }
  func.func @transform_4(%arg0: i32) -> (i32, i32) {
    %c0_i32 = arith.constant 0 : i32
    %c0_i32_0 = arith.constant 0 : i32
    %c0_i32_1 = arith.constant 0 : i32
    return %c0_i32, %c0_i32_0 : i32, i32
  }
  func.func @transform_5(%arg0: i32) -> (i32, i32) {
    %c0_i32 = arith.constant 0 : i32
    %c0_i32_0 = arith.constant 0 : i32
    %c0_i32_1 = arith.constant 0 : i32
    return %c0_i32, %c0_i32_0 : i32, i32
  }
  func.func @transform_6(%arg0: i32) -> (i32, i32) {
    %c0_i32 = arith.constant 0 : i32
    %c0_i32_0 = arith.constant 0 : i32
    %c0_i32_1 = arith.constant 0 : i32
    return %c0_i32, %c0_i32_0 : i32, i32
  }
  func.func @transform_7(%arg0: i32) -> (i32, i32) {
    %c0_i32 = arith.constant 0 : i32
    %c0_i32_0 = arith.constant 0 : i32
    %c0_i32_1 = arith.constant 0 : i32
    return %c0_i32, %c0_i32_0 : i32, i32
  }
  func.func @transform_8(%arg0: i32) -> (i32, i32, i32) {
    %c0_i32 = arith.constant 0 : i32
    %c0_i32_0 = arith.constant 0 : i32
    %c0_i32_1 = arith.constant 0 : i32
    %c0_i32_2 = arith.constant 0 : i32
    return %c0_i32, %c0_i32_0, %c0_i32_1 : i32, i32, i32
  }
  func.func @transform_9(%arg0: i32) -> (i32, i32) {
    %c0_i32 = arith.constant 0 : i32
    %c0_i32_0 = arith.constant 0 : i32
    %c0_i32_1 = arith.constant 0 : i32
    return %c0_i32, %c0_i32_0 : i32, i32
  }
  func.func @transform_10(%arg0: i32) -> (i32, i32) {
    %c0_i32 = arith.constant 0 : i32
    %c0_i32_0 = arith.constant 0 : i32
    %c0_i32_1 = arith.constant 0 : i32
    return %c0_i32, %c0_i32_0 : i32, i32
  }
  func.func @transform_11(%arg0: i32) -> (i32, i32) {
    %c0_i32 = arith.constant 0 : i32
    %c0_i32_0 = arith.constant 0 : i32
    %c0_i32_1 = arith.constant 0 : i32
    return %c0_i32, %c0_i32_0 : i32, i32
  }
  func.func @transform_12(%arg0: i32) -> (i32, i32) {
    %c0_i32 = arith.constant 0 : i32
    %c0_i32_0 = arith.constant 0 : i32
    %c0_i32_1 = arith.constant 0 : i32
    return %c0_i32, %c0_i32_0 : i32, i32
  }
  func.func @transform_13(%arg0: i32) -> (i32, i32) {
    %c0_i32 = arith.constant 0 : i32
    %c0_i32_0 = arith.constant 0 : i32
    %c0_i32_1 = arith.constant 0 : i32
    return %c0_i32, %c0_i32_0 : i32, i32
  }
  func.func @transform_14(%arg0: i32) -> (i32, i32) {
    %c0_i32 = arith.constant 0 : i32
    %c0_i32_0 = arith.constant 0 : i32
    %c0_i32_1 = arith.constant 0 : i32
    return %c0_i32, %c0_i32_0 : i32, i32
  }
  func.func @transform_15(%arg0: i32) -> (i32, i32) {
    %c0_i32 = arith.constant 0 : i32
    %c0_i32_0 = arith.constant 0 : i32
    %c0_i32_1 = arith.constant 0 : i32
    return %c0_i32, %c0_i32_0 : i32, i32
  }
  func.func @transform_16(%arg0: i32) -> (i32, i32, i32) {
    %c0_i32 = arith.constant 0 : i32
    %c0_i32_0 = arith.constant 0 : i32
    %c0_i32_1 = arith.constant 0 : i32
    %c0_i32_2 = arith.constant 0 : i32
    return %c0_i32, %c0_i32_0, %c0_i32_1 : i32, i32, i32
  }
  func.func @transform_17(%arg0: i32) -> (i32, i32) {
    %c0_i32 = arith.constant 0 : i32
    %c0_i32_0 = arith.constant 0 : i32
    %c0_i32_1 = arith.constant 0 : i32
    return %c0_i32, %c0_i32_0 : i32, i32
  }
  func.func @transform_18(%arg0: i32) -> (i32, i32) {
    %c0_i32 = arith.constant 0 : i32
    %c0_i32_0 = arith.constant 0 : i32
    %c0_i32_1 = arith.constant 0 : i32
    return %c0_i32, %c0_i32_0 : i32, i32
  }
  func.func @transform_19(%arg0: i32) -> (i32, i32) {
    %c0_i32 = arith.constant 0 : i32
    %c0_i32_0 = arith.constant 0 : i32
    %c0_i32_1 = arith.constant 0 : i32
    return %c0_i32, %c0_i32_0 : i32, i32
  }
  func.func @transform_20(%arg0: i32) -> (i32, i32) {
    %c0_i32 = arith.constant 0 : i32
    %c0_i32_0 = arith.constant 0 : i32
    %c0_i32_1 = arith.constant 0 : i32
    return %c0_i32, %c0_i32_0 : i32, i32
  }
  func.func @transform_21(%arg0: i32) -> (i32, i32) {
    %c0_i32 = arith.constant 0 : i32
    %c0_i32_0 = arith.constant 0 : i32
    %c0_i32_1 = arith.constant 0 : i32
    return %c0_i32, %c0_i32_0 : i32, i32
  }
  func.func @transform_22(%arg0: i32) -> (i32, i32) {
    %c0_i32 = arith.constant 0 : i32
    %c0_i32_0 = arith.constant 0 : i32
    %c0_i32_1 = arith.constant 0 : i32
    return %c0_i32, %c0_i32_0 : i32, i32
  }
  func.func @transform_23(%arg0: i32) -> (i32, i32) {
    %c0_i32 = arith.constant 0 : i32
    %c0_i32_0 = arith.constant 0 : i32
    %c0_i32_1 = arith.constant 0 : i32
    return %c0_i32, %c0_i32_0 : i32, i32
  }
  func.func @transform_24(%arg0: i32) -> (i32, i32, i32) {
    %c0_i32 = arith.constant 0 : i32
    %c0_i32_0 = arith.constant 0 : i32
    %c0_i32_1 = arith.constant 0 : i32
    return %arg0, %c0_i32, %c0_i32_0 : i32, i32, i32
  }
}

</mosaic_0001>

<bundles_post_ra>
// kernel: tpu_custom_call.1
= control target key start
LH: loop header
LB: loop body
LE: loop exit
PB: predicated region body
PF: predicated region fallthrough
CT: control target
= control target key end

     0   :  { %s6635_s0 = inlined_call_operand.vmem [shape: f32[2,8,32], index: 0, kind: input, shape index: {}]   ;;  %s6636_s1 = inlined_call_operand.vmem [shape: f32[2,16,32], index: 1, kind: input, shape index: {}]   ;;  %s6637_s2 = inlined_call_operand.vmem [shape: f32[2,8,8], index: 2, kind: input, shape index: {}]   ;;  %s6638_s3 = inlined_call_operand.vmem [shape: f32[2,1,16], index: 3, kind: input, shape index: {}]   ;;  %s6639_s4 = inlined_call_operand.vmem [shape: f32[1,32], index: 4, kind: input, shape index: {}]   ;;  %s6640_s5 = inlined_call_operand.vmem [shape: f32[1,32], index: 5, kind: input, shape index: {}]   ;;  %s6641_s6 = inlined_call_operand.vmem [shape: bf16[32,96], index: 6, kind: input, shape index: {}]   ;;  %s6642_s7 = inlined_call_operand.vmem [shape: f32[1,96], index: 7, kind: input, shape index: {}]   ;;  %s6643_s8 = inlined_call_operand.vmem [shape: bf16[4,8,32], index: 8, kind: input, shape index: {}]   ;;  %s6644_s9 = inlined_call_operand.vmem [shape: f32[1,32], index: 9, kind: input, shape index: {}]   ;;  %s6645_s10 = inlined_call_operand.vmem [shape: f32[1,32], index: 10, kind: input, shape index: {}]   ;;  %s6646_s11 = inlined_call_operand.vmem [shape: f32[1,32], index: 11, kind: input, shape index: {}]   ;;  %s6647_s12 = inlined_call_operand.vmem [shape: bf16[32,32], index: 12, kind: input, shape index: {}]   ;;  %s6648_s13 = inlined_call_operand.vmem [shape: f32[1,32], index: 13, kind: input, shape index: {}]   ;;  %s6649_s14 = inlined_call_operand.vmem [shape: bf16[32,64], index: 14, kind: input, shape index: {}]   ;;  %s6650_s15 = inlined_call_operand.vmem [shape: f32[1,64], index: 15, kind: input, shape index: {}]   ;;  %s6651_s16 = inlined_call_operand.vmem [shape: bf16[4,8,32], index: 16, kind: input, shape index: {}]   ;;  %s6652_s17 = inlined_call_operand.vmem [shape: f32[1,32], index: 17, kind: input, shape index: {}]   ;;  %s6653_s18 = inlined_call_operand.vmem [shape: f32[1,32], index: 18, kind: input, shape index: {}]   ;;  %s6654_s19 = inlined_call_operand.vmem [shape: f32[1,32], index: 19, kind: input, shape index: {}]   ;;  %s6655_s20 = inlined_call_operand.vmem [shape: bf16[32,2048], index: 20, kind: input, shape index: {}]   ;;  %s6656_s21 = inlined_call_operand.vmem [shape: f32[1,2048], index: 21, kind: input, shape index: {}]   ;;  %s6657_s22 = inlined_call_operand.vmem [shape: bf16[2048,32], index: 22, kind: input, shape index: {}]   ;;  %s6658_s23 = inlined_call_operand.vmem [shape: f32[1,32], index: 23, kind: input, shape index: {}]   ;;  %s6659_s24 = inlined_call_operand.hbm [shape: f32[2,8,32], index: 24, kind: output, shape index: {}]  }
   0x1   :  { %6678 = sst [smem:[#allocation10_spill]] %s6635_s0 }
   0x2   :  { %6679 = sst [smem:[#allocation11_spill]] %s6636_s1 }
   0x3   :  { %6680 = sst [smem:[#allocation12_spill]] %s6637_s2 }
   0x4   :  { %6681 = sst [smem:[#allocation13_spill]] %s6638_s3 }
   0x5   :  { %6682 = sst [smem:[#allocation14_spill]] %s6639_s4 }
   0x6   :  { %6683 = sst [smem:[#allocation15_spill]] %s6640_s5 }
   0x7   :  { %6684 = sst [smem:[#allocation16_spill]] %s6641_s6 }
   0x8   :  { %6685 = sst [smem:[#allocation17_spill]] %s6642_s7 }
   0x9   :  { %6686 = sst [smem:[#allocation18_spill]] %s6643_s8 }
   0xa   :  { %6687 = sst [smem:[#allocation19_spill]] %s6644_s9 }
   0xb   :  { %29 = vsyncpa [#allocation3], 0 }
   0xc   :  { %31 = vsyncpa [#allocation3 + $0x1], 0  ;;  %s5620_s5 = smov 0   ;;  %s5622_s26 = smov 0  }
   0xd   :  { %s5624_s27 = smov 0   ;;  %s5626_s28 = smov 0  }
   0xe LB: > { %6688 = sst [smem:[#allocation5_spill]] %s5472_s5  ;;  %s5641_s6 = sadd.s32 4294967295, %s5484_s28   ;;  %s5484_s28 = sphi %s5626_s28, %s6712_s28   ;;  %s5480_s27 = sphi %s5624_s27, %s6714_s27   ;;  %s5476_s26 = sphi %s5622_s26, %s6716_s26   ;;  %s5472_s5 = sphi %s5620_s5, %s6715_s5  }
   0xf   : > { %6689 = sst [smem:[#allocation6_spill]] %s5480_s27  ;;  %s4555_s2 = sadd.s32 4294967294, %s5484_s28  }
  0x10   : > { %s5645_s29 = sadd.s32 1, %s5484_s28   ;;  %s568_s0 = sadd.s32 1, %s5480_s27 }
  0x11   : > { %6690 = sst [smem:[#allocation7_spill]] %s5645_s29  ;;  %s565_s7 = ssub.s32 %s5484_s28, %s5645_s29 }
  0x12   : > { %p578_p0 = scmp.ne.s32.totalorder %s5480_s27, %s5476_s26  ;;  %p566_p1 = scmp.eq.s32.totalorder %s565_s7, 0 }
  0x13   : > { %p579_p2 = scmp.eq.s32.totalorder %s5641_s6, 1  ;;  %p584_p3 = scmp.ne.s32.totalorder %s5476_s26, %s5472_s5 }
  0x14   : > { %p585_p4 = scmp.eq.s32.totalorder %s4555_s2, 1  ;;  %p4558_p7 = scmp.ge.s32.totalorder %s5484_s28, 1 }
  0x15   : > { %s5656_s30 = scalar_select %p566_p1, %s5480_s27, %s568_s0  }
  0x16   : > { %p5658_p5 = por %p579_p2, %p578_p0  ;;  %p5662_p6 = por %p585_p4, %p584_p3 }
  0x17   : > { %6691 = sst [smem:[#allocation8_spill]] %s5656_s30  ;;  %p691_p8 = scmp.lt.s32.totalorder %s5484_s28, 3 }
  0x18   : > { %s6693_s25 = scalar_select %p5662_p6, 1, 0 }
  0x19   : > { %p692_p9 = pnand %p4558_p7, %p691_p8 }
  0x1a   : > { %6694 = sst [smem:[#allocation9_spill]] %s6693_s25  ;;  %p768_p10 = scmp.lt.s32.totalorder (!%p692_p9), %s5641_s6, 1 }
  0x1b   : > { %695 = sbr.rel (%p692_p9) target bundleno = 4102 (0x1006), region = 116  ;;  %s6695_s0 = sld [smem:[#allocation10_spill]] (!%p692_p9) }
  0x1c   : > { %s6696_s29 = sld [smem:[#allocation16_spill]] (!%p692_p9)  ;;  %s6671_s27 = smov (!%p692_p9), 104  }
  0x1d   : > { %s6699_s5 = sld [smem:[#allocation17_spill]] (!%p692_p9)  ;;  %s6675_s30 = smov (!%p692_p9), 120  }
  0x1e   : > { %s6701_s1 = sld [smem:[#allocation12_spill]] (!%p692_p9)  ;;  %s6705_s25 = smov (!%p692_p9), 120  }
  0x1f   : > { %s6703_s9 = sld [smem:[#allocation19_spill]] (!%p692_p9) }
  0x20   : > { %s5670_s8 = scalar_select %p768_p10, %s5641_s6, 1  ;;  %vm794_vm0 = vcmask 261120   ;;  %v5486_v8 = vmov 0.0   ;;  %vm5487_vm1 = vmmov 0   ;;  %vm930_vm4 = vcmask 64512  }
  0x21   : > { %5015 = vmatprep.subr.bf16.mxu0 %v5486_v8  ;;  %5019 = vmatprep.mubr.msk.bf16.mxu0 %vm5487_vm1, %v5486_v8  ;;  %vm1177_vm6 = vcmask 1043456   ;;  %vm1975_vm10 = vcmask 130048  }
  0x22   : > { %s6665_s4 = sshll.u32 %s5670_s8, 3  ;;  %v5245_v7 = vld [vmem:[%s6696_s29 + $0x8] sm:$0xff]   ;;  %v5246_v9 = vld [vmem:[%s6696_s29] sm:$0xff]   ;;  %5023 = vmatprep.subr.bf16.mxu1 %v5486_v8  ;;  %5025 = vmatprep.mubr.msk.bf16.mxu1 %vm5487_vm1, %v5486_v8  ;;  %s6700_s29 = sshll.u32 %s5670_s8, 3 }
  0x23   : > { %s5678_s7 = scalar_lea.vmem %s6695_s0, %s6665_s4  ;;  %5016 = vmatpush3.bf16.msra.mxu0 %v5245_v7  ;;  %s6697_s0 = sld [smem:[#allocation14_spill]]  ;;  %v4566_v25 = vld [vmem:[%s6699_s5] ss:$0 sm:$0xff] }
  0x24   : > { %v785_v0 = vld [vmem:[%s5678_s7] sm:$0xff]  ;;  %5017 = vmatprep.subr.bf16.mxu0 %v5486_v8  ;;  %s6698_s4 = sld [smem:[#allocation15_spill]]  ;;  %s6669_s5 = smov 96  }
  0x25   : > { %v795_v1 = vsel %vm794_vm0, %v785_v0, 0.0  ;;  %s780_s2 = scalar_lea.vmem %s6701_s1, %s6700_s29  ;;  %s5492_s29 = smov 64  }
  0x26   : > { %796 = vadd.xlane.f32.xlu0 %v795_v1  ;;  %v786_v54 = vld [vmem:[%s780_s2] sm:$0xff]  ;;  %s6702_s1 = sld [smem:[#allocation18_spill]]  ;;  %s4781_s2 = sshll.u32 %s5670_s8, 4 }
  0x27   : > { %5018 = vmatpush3.bf16.msra.mxu0 %v5246_v9  ;;  %vm787_vm5 = vcmp.eq.f32.partialorder %v786_v54, 0.0 }
  0x28   : > { %5029 = vmatprep.subr.bf16.mxu0 %v5486_v8  ;;  %v788_v55 = vsel %vm787_vm5, -1e+09, %v5486_v8 }
  0x29   : > { %v4564_v18 = vld [vmem:[%s6697_s0] ss:$0 sm:$0xff]  ;;  %s6708_s0 = sld [smem:[#allocation13_spill]] }
  0x2a   : > { %v4565_v21 = vld [vmem:[%s6698_s4] ss:$0 sm:$0xff]  ;;  %s6673_s4 = smov 112  }
  0xaf   : > { %v797_v2 = vpop.xlane.xlu0 %796 }
  0xb0   : > { %v799_v3 = vmul.f32 0.03125, %v797_v2 }
  0xb2   : > { %v800_v4 = vsub.f32 %v785_v0, %v799_v3 }
  0xb4   : > { %v801_v5 = vmul.f32 %v800_v4, %v800_v4  ;;  %v822_v19 = vmul.f32 %v4564_v18, %v800_v4 }
  0xb6   : > { %v802_v6 = vsel %vm794_vm0, %v801_v5, 0.0 }
  0xb7   : > { %803 = vadd.xlane.f32.xlu0 %v802_v6 }
 0x140   : > { %v804_v10 = vpop.xlane.xlu0 %803 }
 0x141   : > { %v806_v11 = vmul.f32 0.032258064, %v804_v10 }
 0x143   : > { %5379 = vrsqrt.f32 %v806_v11  ;;  %vm809_vm2 = vcmp.eq.f32.partialorder %v806_v11, inf  ;;  %v812_v14 = vand.u32 2147483648, %v806_v11  ;;  %vm811_vm3 = vcmp.eq.f32.partialorder %v806_v11, 0.0 }
 0x150   : > { %v5380_v12 = vpop.eup %5379 }
 0x151   : > { %v808_v13 = vmul.f32 %v5380_v12, %v806_v11 }
 0x153   : > { %v810_v15 = vsel %vm809_vm2, %v806_v11, %v808_v13 }
 0x154   : > { %v813_v16 = vsel %vm811_vm3, %v812_v14, %v810_v15 }
 0x155   : > { %v814_v17 = vadd.f32 1e-06, %v813_v16 }
 0x157   : > { %5381 = vrcp.f32 %v814_v17 }
 0x164   : > { %v5382_v20 = vpop.eup %5381 }
 0x165   : > { %v823_v22 = vmul.f32 %v5382_v20, %v822_v19 }
 0x167   : > { %v830_v23 = vadd.f32 %v4565_v21, %v823_v22 }
 0x169   : > { %v831_v24 = vpack.c.bf16 %v830_v23, %v830_v23 }
 0x16b   : > { %5020 = vmatmul.mubr.msk.bf16.vlgmr.msra.gmra.mxu0 %vm794_vm0, %v831_v24 }
 0x16c   : > { %5031 = vmatprep.mubr.msk.bf16.mxu0 %vm5487_vm1, %v5486_v8 }
 0x22b   : > { %v892_v26 = vpop.f32.mrf.mxu0 }
 0x22c   : > { %v893_v27 = vadd.f32 %v4566_v25, %v892_v26 }
 0x22d   : > { %v5021_v28 = vpop.f32.mrf.mxu0 }
 0x22e   : > { %920 = vrot.lane.b32.xlu0 %v893_v27, %s6671_s27  ;;  %914 = vrot.lane.b32.xlu1 %v893_v27, %s6675_s30  ;;  %v898_v30 = vmul.f32 0.35355338, %v893_v27  ;;  %v5713_v32 = vpack.c.bf16 %v893_v27, %v893_v27 }
 0x22f   : > { %v895_v29 = vpop.f32.mrf.mxu0 }
 0x230   : > { %v909_v41 = vpack.c.bf16 %v898_v30, %v898_v30 }
 0x231   : > { %v5022_v31 = vpop.f32.mrf.mxu0 }
 0x232   : > { %917 = vrot.lane.b32.xlu1 %v893_v27, %s6673_s4  ;;  %906 = vrot.lane.b32.xlu0 %v898_v30, %s6671_s27 }
 0x236   : > { %928 = vrot.lane.b32.xlu1 %v5713_v32, %s6669_s5 }
 0x23a   : > { %900 = vrot.lane.b32.xlu1 %v898_v30, %s6675_s30 }
 0x2a0   : > { %v915_v33 = vpop.permute.xlu1 %914  ;;  %v921_v37 = vpop.permute.xlu0 %920 }
 0x2a1   : > { %v5718_v34 = vpack.c.bf16 %v915_v33, %v915_v33  ;;  %v5726_v39 = vpack.c.bf16 %v921_v37, %v921_v37 }
 0x2a3   : > { %978 = vrot.lane.b32.xlu1 %v5718_v34, %s6669_s5 }
 0x2a4   : > { %v918_v35 = vpop.permute.xlu1 %917  ;;  %v907_v50 = vpop.permute.xlu0 %906 }
 0x2a5   : > { %v5722_v36 = vpack.c.bf16 %v918_v35, %v918_v35  ;;  %v912_v53 = vpack.c.bf16 %v907_v50, %v907_v50 }
 0x2a7   : > { %1027 = vrot.lane.b32.xlu1 %v5722_v36, %s6669_s5 }
 0x2a8   : > { %v929_v38 = vpop.permute.xlu1 %928 }
 0x2a9   : > { %v935_v40 = vsel %vm930_vm4, %v929_v38, 0 }
 0x2aa   : > { %5024 = vmatpush3.bf16.xpose.msra.mxu1 %v935_v40 }
 0x2ab   : > { %1076 = vrot.lane.b32.xlu1 %v5726_v39, %s6669_s5  ;;  %5035 = vmatprep.subr.bf16.mxu1 %v5486_v8  ;;  %s6704_s5 = sld [smem:[#allocation11_spill]] }
 0x2ac   : > { %v901_v42 = vpop.permute.xlu1 %900 }
 0x2ad   : > { %v910_v47 = vpack.c.bf16 %v901_v42, %v901_v42 }
 0x2af   : > { %903 = vrot.lane.b32.xlu1 %v898_v30, %s6673_s4 }
 0x2b1   : > { %5026 = vmatmul.mubr.msk.bf16.vlgmr.msra.gmra.mxu1 %vm930_vm4, %v909_v41  ;;  %s776_s27 = scalar_lea.vmem %s6704_s5, %s4781_s2  ;;  %s6706_s5 = smov 112  }
 0x2b2   : > { %5037 = vmatprep.mubr.msk.bf16.mxu1 %vm5487_vm1, %v5486_v8  ;;  %s6707_s2 = smov 104  }
 0x315   : > { %v979_v43 = vpop.permute.xlu1 %978 }
 0x316   : > { %v984_v44 = vsel %vm930_vm4, %v979_v43, 0 }
 0x317   : > { %5030 = vmatpush3.bf16.xpose.msra.mxu0 %v984_v44 }
 0x318   : > { %5041 = vmatprep.subr.bf16.mxu0 %v5486_v8 }
 0x319   : > { %v1028_v45 = vpop.permute.xlu1 %1027 }
 0x31a   : > { %v1033_v46 = vsel %vm930_vm4, %v1028_v45, 0 }
 0x31b   : > { %5036 = vmatpush3.bf16.xpose.msra.mxu1 %v1033_v46 }
 0x31c   : > { %5047 = vmatprep.subr.bf16.mxu1 %v5486_v8 }
 0x31d   : > { %v1077_v48 = vpop.permute.xlu1 %1076 }
 0x31e   : > { %v1082_v49 = vsel %vm930_vm4, %v1077_v48, 0  ;;  %5032 = vmatmul.mubr.msk.bf16.vlgmr.msra.gmra.mxu0 %vm930_vm4, %v910_v47 }
 0x31f   : > { %5042 = vmatpush3.bf16.xpose.msra.mxu0 %v1082_v49  ;;  %5043 = vmatprep.mubr.msk.bf16.mxu0 %vm5487_vm1, %v5486_v8 }
 0x320   : > { %5053 = vmatprep.subr.bf16.mxu0 %v5486_v8 }
 0x321   : > { %v904_v51 = vpop.permute.xlu1 %903 }
 0x322   : > { %v911_v52 = vpack.c.bf16 %v904_v51, %v904_v51 }
 0x324   : > { %5038 = vmatmul.mubr.msk.bf16.vlgmr.msra.gmra.mxu1 %vm930_vm4, %v911_v52 }
 0x325   : > { %5049 = vmatprep.mubr.msk.bf16.mxu1 %vm5487_vm1, %v5486_v8 }
 0x326   : > { %5044 = vmatmul.mubr.msk.bf16.vlgmr.msra.gmra.mxu0 %vm930_vm4, %v912_v53 }
 0x327   : > { %5055 = vmatprep.mubr.msk.bf16.mxu0 %vm5487_vm1, %v5486_v8 }
 0x371   : > { %v971_v56 = vpop.f32.mrf.mxu1 }
 0x372   : > { %v972_v57 = vadd.f32 %v971_v56, %v788_v55  ;;  %v1369_v56 = vld [vmem:[%s6702_s1] sm:$0xf] }
 0x373   : > { %v5027_v58 = vpop.f32.mrf.mxu1 }
 0x374   : > { %v1124_v59 = vsel %vm930_vm4, %v972_v57, -inf }
 0x375   : > { %1125 = vmax.xlane.f32.xlu1 %v1124_v59  ;;  %v974_v60 = vpop.f32.mrf.mxu1  ;;  %v1370_v59 = vld [vmem:[%s6702_s1 + $0x4] sm:$0xf] }
 0x377   : > { %v5028_v61 = vpop.f32.mrf.mxu1 }
 0x3de   : > { %v1020_v62 = vpop.f32.mrf.mxu0 }
 0x3df   : > { %v1021_v63 = vadd.f32 %v1020_v62, %v788_v55  ;;  %v1377_v62 = vsel %vm1177_vm6, %v1369_v56, 0 }
 0x3e0   : > { %v5033_v0 = vpop.f32.mrf.mxu0 }
 0x3e1   : > { %v1127_v1 = vsel %vm930_vm4, %v1021_v63, -inf  ;;  %v1423_v0 = vsel %vm1177_vm6, %v1370_v59, 0  ;;  %v5247_v59 = vld [vmem:[%s6649_s14 + $0x8] sm:$0xff]  }
 0x3e2   : > { %1128 = vmax.xlane.f32.xlu0 %v1127_v1  ;;  %v1023_v2 = vpop.f32.mrf.mxu0  ;;  %v1371_v1 = vld [vmem:[%s6702_s1 + $0x8] sm:$0xf] }
 0x3e4   : > { %v5034_v3 = vpop.f32.mrf.mxu0  ;;  %v1069_v4 = vpop.f32.mrf.mxu1 }
 0x3e5   : > { %v1070_v5 = vadd.f32 %v1069_v4, %v788_v55  ;;  %v1469_v4 = vsel %vm1177_vm6, %v1371_v1, 0  ;;  %v5250_v1 = vld [vmem:[%s6647_s12] sm:$0xff]  }
 0x3e6   : > { %v5039_v6 = vpop.f32.mrf.mxu1  ;;  %v1118_v7 = vpop.f32.mrf.mxu0 }
 0x3e7   : > { %v1119_v9 = vadd.f32 %v1118_v7, %v788_v55  ;;  %v1130_v10 = vsel %vm930_vm4, %v1070_v5, -inf }
 0x3e8   : > { %v1072_v11 = vpop.f32.mrf.mxu1  ;;  %1131 = vmax.xlane.f32.xlu0 %v1130_v10  ;;  %v5045_v12 = vpop.f32.mrf.mxu0 }
 0x3e9   : > { %v1133_v13 = vsel %vm930_vm4, %v1119_v9, -inf }
 0x3ea   : > { %v5040_v14 = vpop.f32.mrf.mxu1  ;;  %1134 = vmax.xlane.f32.xlu1 %v1133_v13  ;;  %v1121_v15 = vpop.f32.mrf.mxu0 }
 0x3ec   : > { %v5046_v16 = vpop.f32.mrf.mxu0 }
 0x3fb   : > { %1221 = vrot.lane.b32.xlu1 %v5718_v34, %s5492_s29 }
 0x3fe   : > { %v1126_v17 = vpop.xlane.xlu1 %1125 }
 0x3ff   : > { %v1136_v18 = vsub.f32 %v972_v57, %v1126_v17 }
 0x401   : > { %v1140_v19 = vmul.f32 1.442695, %v1136_v18 }
 0x403   : > { %5383 = vpow2.f32 %v1140_v19 }
 0x410   : > { %v5384_v20 = vpop.eup %5383 }
 0x411   : > { %v1148_v21 = vsel %vm930_vm4, %v5384_v20, 0.0 }
 0x412   : > { %1149 = vadd.xlane.f32.xlu0 %v1148_v21 }
 0x428   : > { %1172 = vrot.lane.b32.xlu0 %v5713_v32, %s5492_s29 }
 0x46b   : > { %v1129_v22 = vpop.xlane.xlu0 %1128 }
 0x46c   : > { %v1137_v23 = vsub.f32 %v1021_v63, %v1129_v22 }
 0x46e   : > { %v1142_v24 = vmul.f32 1.442695, %v1137_v23 }
 0x470   : > { %5385 = vpow2.f32 %v1142_v24 }
 0x471   : > { %v1132_v25 = vpop.xlane.xlu0 %1131 }
 0x472   : > { %v1138_v26 = vsub.f32 %v1070_v5, %v1132_v25 }
 0x473   : > { %v1135_v27 = vpop.xlane.xlu1 %1134 }
 0x474   : > { %v1144_v28 = vmul.f32 1.442695, %v1138_v26  ;;  %v1139_v29 = vsub.f32 %v1119_v9, %v1135_v27  ;;  %v1372_v9 = vld [vmem:[%s6702_s1 + $0xc] sm:$0xf] }
 0x475   : > { %v1515_v12 = vsel %vm1177_vm6, %v1372_v9, 0 }
 0x476   : > { %5387 = vpow2.f32 %v1144_v28  ;;  %v1146_v30 = vmul.f32 1.442695, %v1139_v29 }
 0x477   : > { %v1222_v31 = vpop.permute.xlu1 %1221 }
 0x478   : > { %5389 = vpow2.f32 %v1146_v30  ;;  %v1227_v33 = vsel %vm1177_vm6, %v1222_v31, 0 }
 0x479   : > { %5054 = vmatpush3.bf16.msra.mxu0 %v1227_v33 }
 0x47a   : > { %5065 = vmatprep.subr.bf16.mxu0 %v5486_v8 }
 0x47d   : > { %v5386_v32 = vpop.eup %5385 }
 0x47e   : > { %v1151_v34 = vsel %vm930_vm4, %v5386_v32, 0.0 }
 0x47f   : > { %1152 = vadd.xlane.f32.xlu1 %v1151_v34 }
 0x483   : > { %v5388_v35 = vpop.eup %5387 }
 0x484   : > { %v1154_v37 = vsel %vm930_vm4, %v5388_v35, 0.0 }
 0x485   : > { %v5390_v38 = vpop.eup %5389  ;;  %1155 = vadd.xlane.f32.xlu0 %v1154_v37 }
 0x486   : > { %v1157_v40 = vsel %vm930_vm4, %v5390_v38, 0.0 }
 0x487   : > { %1158 = vadd.xlane.f32.xlu1 %v1157_v40 }
 0x498   : > { %1269 = vrot.lane.b32.xlu1 %v5722_v36, %s5492_s29 }
 0x49b   : > { %1317 = vrot.lane.b32.xlu0 %v5726_v39, %s5492_s29  ;;  %v1150_v41 = vpop.xlane.xlu0 %1149  ;;  %s783_s29 = scalar_lea.vmem %s6708_s0, %s5670_s8  ;;  %s6709_s8 = smov 96  }
 0x49c   : > { %5391 = vrcp.f32 %v1150_v41 }
 0x49f   : > { %v1173_v42 = vpop.permute.xlu0 %1172 }
 0x4a0   : > { %v1179_v43 = vsel %vm1177_vm6, %v1173_v42, 0 }
 0x4a1   : > { %5048 = vmatpush3.bf16.msra.mxu1 %v1179_v43 }
 0x4a2   : > { %5059 = vmatprep.subr.bf16.mxu1 %v5486_v8 }
 0x4a9   : > { %v5392_v44 = vpop.eup %5391 }
 0x4aa   : > { %v1164_v45 = vmul.f32 %v5392_v44, %v5384_v20 }
 0x4ac   : > { %v1168_v46 = vpack.c.bf16 %v1164_v45, %v1164_v45  ;;  %v4582_v45 = vld [vmem:[%s6703_s9] ss:$0 sm:$0xff] }
 0x4ae   : > { %5050 = vmatmul.mubr.msk.bf16.vlgmr.msra.gmra.mxu1 %vm930_vm4, %v1168_v46 }
 0x4af   : > { %5061 = vmatprep.mubr.msk.bf16.mxu1 %vm5487_vm1, %v5486_v8 }
 0x508   : > { %v1153_v36 = vpop.xlane.xlu1 %1152 }
 0x509   : > { %5393 = vrcp.f32 %v1153_v36 }
 0x50e   : > { %v1156_v47 = vpop.xlane.xlu0 %1155 }
 0x50f   : > { %5395 = vrcp.f32 %v1156_v47 }
 0x510   : > { %v1159_v39 = vpop.xlane.xlu1 %1158 }
 0x511   : > { %5397 = vrcp.f32 %v1159_v39 }
 0x512   : > { %v1318_v52 = vpop.permute.xlu0 %1317 }
 0x513   : > { %v1323_v54 = vsel %vm1177_vm6, %v1318_v52, 0 }
 0x514   : > { %v1270_v48 = vpop.permute.xlu1 %1269 }
 0x515   : > { %v1275_v49 = vsel %vm1177_vm6, %v1270_v48, 0 }
 0x516   : > { %v5394_v50 = vpop.eup %5393  ;;  %5060 = vmatpush3.bf16.msra.mxu1 %v1275_v49 }
 0x517   : > { %v1165_v51 = vmul.f32 %v5394_v50, %v5386_v32  ;;  %5071 = vmatprep.subr.bf16.mxu1 %v5486_v8 }
 0x519   : > { %v1169_v53 = vpack.c.bf16 %v1165_v51, %v1165_v51  ;;  %v5423_v51 = vld [vmem:[%s5678_s7] sm:$0xff] }
 0x51b   : > { %5056 = vmatmul.mubr.msk.bf16.vlgmr.msra.gmra.mxu0 %vm930_vm4, %v1169_v53 }
 0x51c   : > { %v5396_v55 = vpop.eup %5395  ;;  %5066 = vmatpush3.bf16.msra.mxu0 %v1323_v54  ;;  %5067 = vmatprep.mubr.msk.bf16.mxu0 %vm5487_vm1, %v5486_v8 }
 0x51d   : > { %v1166_v57 = vmul.f32 %v5396_v55, %v5388_v35  ;;  %5077 = vmatprep.subr.bf16.mxu0 %v5486_v8 }
 0x51e   : > { %v5398_v58 = vpop.eup %5397 }
 0x51f   : > { %v1170_v60 = vpack.c.bf16 %v1166_v57, %v1166_v57  ;;  %v1167_v61 = vmul.f32 %v5398_v58, %v5390_v38 }
 0x521   : > { %5062 = vmatmul.mubr.msk.bf16.vlgmr.msra.gmra.mxu1 %vm930_vm4, %v1170_v60  ;;  %v1171_v63 = vpack.c.bf16 %v1167_v61, %v1167_v61  ;;  %v5248_v60 = vld [vmem:[%s6649_s14] sm:$0xff]  }
 0x522   : > { %5072 = vmatpush3.bf16.msra.mxu1 %v1377_v62  ;;  %5073 = vmatprep.mubr.msk.bf16.mxu1 %vm5487_vm1, %v5486_v8  ;;  %v1573_v61 = vld [vmem:[%s776_s27] sm:$0xff]  ;;  %v1574_v62 = vld [vmem:[%s776_s27 + $0x8] sm:$0xff] }
 0x523   : > { %5068 = vmatmul.mubr.msk.bf16.vlgmr.msra.gmra.mxu0 %vm930_vm4, %v1171_v63  ;;  %5083 = vmatprep.subr.bf16.mxu1 %v5486_v8  ;;  %v1575_v63 = vpack.c.bf16 %v1574_v62, %v1573_v61 }
 0x524   : > { %5078 = vmatpush3.bf16.msra.mxu0 %v1423_v0  ;;  %5079 = vmatprep.mubr.msk.bf16.mxu0 %vm5487_vm1, %v5486_v8  ;;  %v5249_v0 = vld [vmem:[%s6647_s12 + $0x8] sm:$0xff]  }
 0x525   : > { %5089 = vmatprep.subr.bf16.mxu0 %v5486_v8 }
 0x56e   : > { %v1215_v2 = vpop.f32.mrf.mxu1 }
 0x56f   : > { %v1365_v3 = vpack.c.bf16 %v1215_v2, %v1215_v2 }
 0x570   : > { %v5051_v5 = vpop.f32.mrf.mxu1 }
 0x571   : > { %5074 = vmatmul.mubr.msk.bf16.vlgmr.msra.gmra.mxu1 %vm930_vm4, %v1365_v3 }
 0x572   : > { %v1218_v6 = vpop.f32.mrf.mxu1  ;;  %5084 = vmatpush3.bf16.msra.mxu1 %v1469_v4  ;;  %5085 = vmatprep.mubr.msk.bf16.mxu1 %vm5487_vm1, %v5486_v8 }
 0x573   : > { %5095 = vmatprep.subr.bf16.mxu1 %v5486_v8 }
 0x574   : > { %v5052_v7 = vpop.f32.mrf.mxu1 }
 0x5db   : > { %v1263_v10 = vpop.f32.mrf.mxu0 }
 0x5dc   : > { %v1366_v11 = vpack.c.bf16 %v1263_v10, %v1263_v10 }
 0x5dd   : > { %v5057_v13 = vpop.f32.mrf.mxu0 }
 0x5de   : > { %5080 = vmatmul.mubr.msk.bf16.vlgmr.msra.gmra.mxu0 %vm930_vm4, %v1366_v11  ;;  %v4583_v11 = vld [vmem:[%s6645_s10] ss:$0 sm:$0xff] }
 0x5df   : > { %v1266_v14 = vpop.f32.mrf.mxu0  ;;  %5090 = vmatpush3.bf16.msra.mxu0 %v1515_v12  ;;  %5091 = vmatprep.mubr.msk.bf16.mxu0 %vm5487_vm1, %v5486_v8 }
 0x5e0   : > { %5103 = vmatprep.subr.bf16.mxu0 %v5486_v8  ;;  %v4584_v14 = vld [vmem:[%s6646_s11] ss:$0 sm:$0xff] }
 0x5e1   : > { %v5058_v15 = vpop.f32.mrf.mxu0  ;;  %v1311_v16 = vpop.f32.mrf.mxu1 }
 0x5e2   : > { %v1367_v17 = vpack.c.bf16 %v1311_v16, %v1311_v16 }
 0x5e3   : > { %v5063_v18 = vpop.f32.mrf.mxu1  ;;  %v1359_v19 = vpop.f32.mrf.mxu0 }
 0x5e4   : > { %v1368_v20 = vpack.c.bf16 %v1359_v19, %v1359_v19  ;;  %5086 = vmatmul.mubr.msk.bf16.vlgmr.msra.gmra.mxu1 %vm930_vm4, %v1367_v17  ;;  %v4589_v18 = vld [vmem:[%s6650_s15] ss:$0 sm:$0xff] }
 0x5e5   : > { %v1314_v21 = vpop.f32.mrf.mxu1  ;;  %v5069_v22 = vpop.f32.mrf.mxu0  ;;  %5099 = vmatprep.mubr.msk.bf16.mxu1 %vm5487_vm1, %v5486_v8  ;;  %5096 = vmatpush3.bf16.msra.mxu1 %v5249_v0 }
 0x5e6   : > { %5092 = vmatmul.mubr.msk.bf16.vlgmr.msra.gmra.mxu0 %vm930_vm4, %v1368_v20  ;;  %5097 = vmatprep.subr.bf16.mxu1 %v5486_v8 }
 0x5e7   : > { %v5064_v23 = vpop.f32.mrf.mxu1  ;;  %v1362_v24 = vpop.f32.mrf.mxu0  ;;  %5107 = vmatprep.mubr.msk.bf16.mxu0 %vm5487_vm1, %v5486_v8  ;;  %5104 = vmatpush3.bf16.msra.mxu0 %v5247_v59  ;;  %v789_v59 = vld [vmem:[%s783_s29] sm:$0x1] }
 0x5e8   : > { %5105 = vmatprep.subr.bf16.mxu0 %v5486_v8  ;;  %vm790_vm9 = vcmp.eq.f32.partialorder %v789_v59, 0.0 }
 0x5e9   : > { %v5070_v25 = vpop.f32.mrf.mxu0  ;;  %5098 = vmatpush3.bf16.msra.mxu1 %v5250_v1  ;;  %v791_v62 = vsel %vm790_vm9, -1e+09, %v5486_v8 }
 0x5ea   : > { %5111 = vmatprep.subr.bf16.mxu1 %v5486_v8 }
 0x5eb   : > { %5106 = vmatpush3.bf16.msra.mxu0 %v5248_v60 }
 0x5ec   : > { %5117 = vmatprep.subr.bf16.mxu0 %v5486_v8 }
 0x5ee   : > { %5108 = vmatmul.mubr.msk.bf16.vlgmr.msra.gmra.mxu0 %vm794_vm0, %v1575_v63 }
 0x5ef   : > { %5119 = vmatprep.mubr.msk.bf16.mxu0 %vm5487_vm1, %v5486_v8 }
 0x631   : > { %v1413_v26 = vpop.f32.mrf.mxu1 }
 0x632   : > { %v1557_v34 = vsel %vm794_vm0, %v1413_v26, 0.0 }
 0x633   : > { %v5075_v27 = vpop.f32.mrf.mxu1 }
 0x635   : > { %v1416_v28 = vpop.f32.mrf.mxu1 }
 0x637   : > { %v5076_v29 = vpop.f32.mrf.mxu1 }
 0x69e   : > { %v1459_v30 = vpop.f32.mrf.mxu0 }
 0x69f   : > { %v1558_v33 = vsel %vm794_vm0, %v1459_v30, 0.0 }
 0x6a0   : > { %v5081_v31 = vpop.f32.mrf.mxu0  ;;  %v1559_v35 = vadd.f32 %v1558_v33, %v1557_v34 }
 0x6a2   : > { %v1462_v32 = vpop.f32.mrf.mxu0 }
 0x6a4   : > { %v5082_v37 = vpop.f32.mrf.mxu0  ;;  %v1505_v38 = vpop.f32.mrf.mxu1 }
 0x6a5   : > { %v1560_v40 = vsel %vm794_vm0, %v1505_v38, 0.0  ;;  %v4585_v37 = vld [vmem:[%s6648_s13] ss:$0 sm:$0xff] }
 0x6a6   : > { %v1561_v41 = vadd.f32 %v1560_v40, %v1559_v35  ;;  %v5087_v42 = vpop.f32.mrf.mxu1  ;;  %v1551_v43 = vpop.f32.mrf.mxu0 }
 0x6a7   : > { %v1562_v44 = vsel %vm794_vm0, %v1551_v43, 0.0 }
 0x6a8   : > { %v1563_v46 = vadd.f32 %v1562_v44, %v1561_v41  ;;  %v1508_v36 = vpop.f32.mrf.mxu1  ;;  %v5093_v47 = vpop.f32.mrf.mxu0 }
 0x6aa   : > { %v1571_v39 = vadd.f32 %v4582_v45, %v1563_v46  ;;  %v5088_v48 = vpop.f32.mrf.mxu1  ;;  %v1554_v49 = vpop.f32.mrf.mxu0 }
 0x6ac   : > { %v5094_v50 = vpop.f32.mrf.mxu0  ;;  %v5833_v52 = vadd.f32 %v5423_v51, %v1571_v39 }
 0x6ae   : > { %v1578_v53 = vsel %vm794_vm0, %v5833_v52, 0.0  ;;  %v1739_v19 = vpop.f32.mrf.mxu0 }
 0x6af   : > { %1579 = vadd.xlane.f32.xlu1 %v1578_v53  ;;  %v1740_v21 = vadd.f32 %v4589_v18, %v1739_v19 }
 0x6b0   : > { %v5109_v20 = vpop.f32.mrf.mxu0 }
 0x6b2   : > { %v1742_v22 = vpop.f32.mrf.mxu0 }
 0x6b3   : > { %v1743_v23 = vadd.f32 %v4589_v18, %v1742_v22 }
 0x6b4   : > { %v5110_v24 = vpop.f32.mrf.mxu0 }
 0x6b5   : > { %v5230_v25 = vpack.i.bf16 %v1743_v23, %v1740_v21  ;;  %v5874_v26 = vpack.c.bf16 %v1743_v23, %v1740_v21 }
 0x6b7   : > { %v1795_v27 = vsel %vm930_vm4, %v5874_v26, 0 }
 0x6c0   : > { %5236 = vrot.lane.b32.xlu1 %v5230_v25, %s6706_s5 }
 0x738   : > { %v1580_v54 = vpop.xlane.xlu1 %1579 }
 0x739   : > { %v1581_v55 = vmul.f32 0.03125, %v1580_v54 }
 0x73b   : > { %v1582_v56 = vsub.f32 %v5833_v52, %v1581_v55 }
 0x73c   : > { %v5237_v32 = vpop.permute.xlu1 %5236 }
 0x73d   : > { %v1583_v57 = vmul.f32 %v1582_v56, %v1582_v56  ;;  %v1603_v12 = vmul.f32 %v4583_v11, %v1582_v56  ;;  %v5239_v34 = vunpack.i.h.bf16 %v5237_v32  ;;  %v5238_v35 = vunpack.i.l.bf16 %v5237_v32 }
 0x73f   : > { %v1584_v58 = vsel %vm794_vm0, %v1583_v57, 0.0  ;;  %v5890_v41 = vpack.c.bf16 %v5239_v34, %v5238_v35 }
 0x740   : > { %1585 = vadd.xlane.f32.xlu0 %v1584_v58  ;;  %v1786_v58 = vlaneseq }
 0x741   : > { %v1887_v46 = vsel %vm930_vm4, %v5890_v41, 0 }
 0x742   : > { %v5919_v60 = vshrl.u32 %v1786_v58, 7 }
 0x744   : > { %v5922_v61 = vsub.s32 0, %v5919_v60 }
 0x746   : > { %v1789_v63 = vrot.slane %v791_v62, %v5922_v61  ;;  %v2216_v62 = vld [vmem:[%s6651_s16] sm:$0xf] }
 0x756   : > { %5231 = vrot.lane.b32.xlu0 %v5230_v25, %s6705_s25 }
 0x75a   : > { %5241 = vrot.lane.b32.xlu0 %v5230_v25, %s6707_s2 }
 0x7c9   : > { %v1586_v2 = vpop.xlane.xlu0 %1585 }
 0x7ca   : > { %v1587_v3 = vmul.f32 0.032258064, %v1586_v2 }
 0x7cc   : > { %5399 = vrsqrt.f32 %v1587_v3  ;;  %vm1590_vm7 = vcmp.eq.f32.partialorder %v1587_v3, inf  ;;  %v1593_v6 = vand.u32 2147483648, %v1587_v3  ;;  %vm1592_vm8 = vcmp.eq.f32.partialorder %v1587_v3, 0.0 }
 0x7cd   : > { %v5232_v28 = vpop.permute.xlu0 %5231 }
 0x7ce   : > { %v5234_v29 = vunpack.i.h.bf16 %v5232_v28  ;;  %v5233_v30 = vunpack.i.l.bf16 %v5232_v28 }
 0x7d0   : > { %v5882_v31 = vpack.c.bf16 %v5234_v29, %v5233_v30 }
 0x7d1   : > { %v5242_v47 = vpop.permute.xlu0 %5241 }
 0x7d2   : > { %v1841_v33 = vsel %vm930_vm4, %v5882_v31, 0  ;;  %v5244_v39 = vunpack.i.h.bf16 %v5242_v47  ;;  %v5243_v48 = vunpack.i.l.bf16 %v5242_v47 }
 0x7d3   : > { %5118 = vmatpush3.bf16.xpose.msra.mxu0 %v1841_v33 }
 0x7d4   : > { %5129 = vmatprep.subr.bf16.mxu0 %v5486_v8  ;;  %v5901_v49 = vpack.c.bf16 %v5244_v39, %v5243_v48 }
 0x7d6   : > { %v1933_v53 = vsel %vm930_vm4, %v5901_v49, 0 }
 0x7d9   : > { %v5400_v4 = vpop.eup %5399 }
 0x7da   : > { %v1589_v5 = vmul.f32 %v5400_v4, %v1587_v3 }
 0x7dc   : > { %v1591_v7 = vsel %vm1590_vm7, %v1587_v3, %v1589_v5 }
 0x7dd   : > { %v1594_v9 = vsel %vm1592_vm8, %v1593_v6, %v1591_v7 }
 0x7de   : > { %v1595_v10 = vadd.f32 1e-06, %v1594_v9 }
 0x7e0   : > { %5401 = vrcp.f32 %v1595_v10 }
 0x7ed   : > { %v5402_v13 = vpop.eup %5401 }
 0x7ee   : > { %v1604_v15 = vmul.f32 %v5402_v13, %v1603_v12 }
 0x7f0   : > { %v1611_v16 = vadd.f32 %v4584_v14, %v1604_v15 }
 0x7f2   : > { %v1612_v17 = vpack.c.bf16 %v1611_v16, %v1611_v16 }
 0x7f4   : > { %5100 = vmatmul.mubr.msk.bf16.vlgmr.msra.gmra.mxu1 %vm794_vm0, %v1612_v17 }
 0x7f5   : > { %5113 = vmatprep.mubr.msk.bf16.mxu1 %vm5487_vm1, %v5486_v8  ;;  %5112 = vmatpush3.bf16.xpose.msra.mxu1 %v1795_v27 }
 0x7f6   : > { %5123 = vmatprep.subr.bf16.mxu1 %v5486_v8 }
 0x8b4   : > { %v1673_v38 = vpop.f32.mrf.mxu1 }
 0x8b5   : > { %v1674_v40 = vadd.f32 %v4585_v37, %v1673_v38 }
 0x8b6   : > { %v5101_v42 = vpop.f32.mrf.mxu1 }
 0x8b7   : > { %v1746_v43 = vmul.f32 0.35355338, %v1674_v40 }
 0x8b8   : > { %v1676_v44 = vpop.f32.mrf.mxu1 }
 0x8b9   : > { %v1757_v45 = vpack.c.bf16 %v1746_v43, %v1746_v43  ;;  %1748 = vrot.lane.b32.xlu1 %v1746_v43, %s6705_s25  ;;  %1754 = vrot.lane.b32.xlu0 %v1746_v43, %s6707_s2  ;;  %s765_s25 = sand.u32 1, %s5476_s26   ;;  %s4778_s2 = sshll.u32 %s5641_s6, 7 }
 0x8ba   : > { %v5102_v36 = vpop.f32.mrf.mxu1  ;;  %s4461_s0 = scalar_lea.hbm %s6659_s24, %s4778_s2  ;;  %s4450_s29 = scalar_lea.sflag [#allocation3], %s765_s25 }
 0x8bb   : > { %5114 = vmatmul.mubr.msk.bf16.vlgmr.msra.gmra.mxu1 %vm930_vm4, %v1757_v45  ;;  %s5494_s6 = smov [#allocation2]  }
 0x8bc   : > { %5124 = vmatpush3.bf16.xpose.msra.mxu1 %v1887_v46  ;;  %5125 = vmatprep.mubr.msk.bf16.mxu1 %vm5487_vm1, %v5486_v8 }
 0x8bd   : > { %1751 = vrot.lane.b32.xlu1 %v1746_v43, %s6706_s5  ;;  %5135 = vmatprep.subr.bf16.mxu1 %v5486_v8  ;;  %s4559_s5 = sshll.u32 %s765_s25, 3 }
 0x8be   : > { %s767_s27 = scalar_lea.vmem [#allocation2], %s4559_s5  ;;  %s5428_s5 = sshll.u32 %s5494_s6, 4  ;;  %s5429_s5 = int_to_ptr.vmem [resolvable:$false] %s5428_s5 }
 0x8bf   : > { %s4463_s30 = sshll.u32 %s767_s27, 4  ;;  %s5430_s1 = scalar_lea.vmem %s5429_s5, 256  ;;  %s4464_s30 = int_to_ptr.vmem [resolvable:$true] %s4463_s30 }
 0x8c0   : > { %p5431_p0 = scmp.lt.s32.totalorder %s4464_s30, %s5429_s5 }
 0x92b   : > { %v1749_v50 = vpop.permute.xlu1 %1748  ;;  %v1755_v56 = vpop.permute.xlu0 %1754 }
 0x92c   : > { %v1758_v51 = vpack.c.bf16 %v1749_v50, %v1749_v50  ;;  %v1760_v57 = vpack.c.bf16 %v1755_v56, %v1755_v56 }
 0x92e   : > { %5120 = vmatmul.mubr.msk.bf16.vlgmr.msra.gmra.mxu0 %vm930_vm4, %v1758_v51 }
 0x92f   : > { %5130 = vmatpush3.bf16.xpose.msra.mxu0 %v1933_v53  ;;  %v1752_v54 = vpop.permute.xlu1 %1751  ;;  %5131 = vmatprep.mubr.msk.bf16.mxu0 %vm5487_vm1, %v5486_v8 }
 0x930   : > { %v1759_v55 = vpack.c.bf16 %v1752_v54, %v1752_v54  ;;  %5141 = vmatprep.subr.bf16.mxu0 %v5486_v8 }
 0x932   : > { %5126 = vmatmul.mubr.msk.bf16.vlgmr.msra.gmra.mxu1 %vm930_vm4, %v1759_v55 }
 0x933   : > { %5137 = vmatprep.mubr.msk.bf16.mxu1 %vm5487_vm1, %v5486_v8 }
 0x936   : > { %5132 = vmatmul.mubr.msk.bf16.vlgmr.msra.gmra.mxu0 %vm930_vm4, %v1760_v57 }
 0x937   : > { %5143 = vmatprep.mubr.msk.bf16.mxu0 %vm5487_vm1, %v5486_v8 }
 0x97b   : > { %v1831_v0 = vpop.f32.mrf.mxu1 }
 0x97c   : > { %v1832_v1 = vadd.f32 %v1831_v0, %v1789_v63 }
 0x97d   : > { %v5115_v2 = vpop.f32.mrf.mxu1 }
 0x97e   : > { %v1976_v3 = vsel %vm1975_vm10, %v1832_v1, -inf  ;;  %v2224_v2 = vsel %vm1177_vm6, %v2216_v62, 0 }
 0x97f   : > { %1977 = vmax.xlane.f32.xlu1 %v1976_v3  ;;  %v1834_v4 = vpop.f32.mrf.mxu1 }
 0x980   : > { %v2217_v4 = vld [vmem:[%s6651_s16 + $0x4] sm:$0xf] }
 0x981   : > { %v5116_v5 = vpop.f32.mrf.mxu1 }
 0x9ee   : > { %v1877_v6 = vpop.f32.mrf.mxu0 }
 0x9ef   : > { %v1878_v7 = vadd.f32 %v1877_v6, %v1789_v63 }
 0x9f0   : > { %v5121_v9 = vpop.f32.mrf.mxu0 }
 0x9f1   : > { %v1979_v10 = vsel %vm1975_vm10, %v1878_v7, -inf  ;;  %v2218_v9 = vld [vmem:[%s6651_s16 + $0x8] sm:$0xf] }
 0x9f2   : > { %v1923_v11 = vpop.f32.mrf.mxu1  ;;  %1980 = vmax.xlane.f32.xlu0 %v1979_v10  ;;  %v1880_v12 = vpop.f32.mrf.mxu0 }
 0x9f3   : > { %v1924_v13 = vadd.f32 %v1923_v11, %v1789_v63  ;;  %v2316_v12 = vsel %vm1177_vm6, %v2218_v9, 0  ;;  %v2457_v9 = vld [vmem:[%s6655_s20] sm:$0xff] }
 0x9f4   : > { %v5122_v14 = vpop.f32.mrf.mxu0  ;;  %v5127_v15 = vpop.f32.mrf.mxu1 }
 0x9f5   : > { %v1982_v16 = vsel %vm1975_vm10, %v1924_v13, -inf }
 0x9f6   : > { %v1926_v17 = vpop.f32.mrf.mxu1  ;;  %1983 = vmax.xlane.f32.xlu0 %v1982_v16  ;;  %v1969_v18 = vpop.f32.mrf.mxu0  ;;  %v2219_v16 = vld [vmem:[%s6651_s16 + $0xc] sm:$0xf] }
 0x9f7   : > { %v1970_v19 = vadd.f32 %v1969_v18, %v1789_v63 }
 0x9f8   : > { %v5128_v20 = vpop.f32.mrf.mxu1  ;;  %v5133_v21 = vpop.f32.mrf.mxu0 }
 0x9f9   : > { %v1985_v22 = vsel %vm1975_vm10, %v1970_v19, -inf }
 0x9fa   : > { %1986 = vmax.xlane.f32.xlu1 %v1985_v22  ;;  %v1972_v23 = vpop.f32.mrf.mxu0 }
 0x9fc   : > { %v5134_v24 = vpop.f32.mrf.mxu0 }
 0xa08   : > { %v1978_v25 = vpop.xlane.xlu1 %1977 }
 0xa09   : > { %v1988_v27 = vsub.f32 %v1832_v1, %v1978_v25 }
 0xa0b   : > { %v1992_v28 = vmul.f32 1.442695, %v1988_v27  ;;  %2072 = vrot.lane.b32.xlu1 %v5882_v31, %s6709_s8 }
 0xa0d   : > { %5403 = vpow2.f32 %v1992_v28 }
 0xa1a   : > { %v5404_v29 = vpop.eup %5403 }
 0xa1b   : > { %v2000_v30 = vsel %vm1975_vm10, %v5404_v29, 0.0 }
 0xa1c   : > { %2001 = vadd.xlane.f32.xlu0 %v2000_v30 }
 0xa32   : > { %2025 = vrot.lane.b32.xlu0 %v5874_v26, %s6709_s8 }
 0xa7b   : > { %v1981_v33 = vpop.xlane.xlu0 %1980 }
 0xa7c   : > { %v1989_v32 = vsub.f32 %v1878_v7, %v1981_v33  ;;  %v2270_v7 = vsel %vm1177_vm6, %v2217_v4, 0  ;;  %v2474_v4 = vld [vmem:[%s6655_s20 + $0x88] sm:$0xff] }
 0xa7e   : > { %v1994_v34 = vmul.f32 1.442695, %v1989_v32 }
 0xa7f   : > { %v1984_v35 = vpop.xlane.xlu0 %1983 }
 0xa80   : > { %5405 = vpow2.f32 %v1994_v34  ;;  %v1990_v37 = vsub.f32 %v1924_v13, %v1984_v35 }
 0xa82   : > { %v1996_v38 = vmul.f32 1.442695, %v1990_v37 }
 0xa83   : > { %v1987_v40 = vpop.xlane.xlu1 %1986 }
 0xa84   : > { %5407 = vpow2.f32 %v1996_v38  ;;  %v1991_v42 = vsub.f32 %v1970_v19, %v1987_v40  ;;  %v2362_v19 = vsel %vm1177_vm6, %v2219_v16, 0  ;;  %v2466_v16 = vld [vmem:[%s6655_s20 + $0x48] sm:$0xff] }
 0xa86   : > { %v1998_v43 = vmul.f32 1.442695, %v1991_v42 }
 0xa87   : > { %v2073_v31 = vpop.permute.xlu1 %2072 }
 0xa88   : > { %5409 = vpow2.f32 %v1998_v43  ;;  %5142 = vmatpush3.bf16.msra.mxu0 %v2073_v31 }
 0xa89   : > { %5153 = vmatprep.subr.bf16.mxu0 %v5486_v8 }
 0xa8d   : > { %v5406_v44 = vpop.eup %5405 }
 0xa8e   : > { %v2003_v45 = vsel %vm1975_vm10, %v5406_v44, 0.0 }
 0xa8f   : > { %2004 = vadd.xlane.f32.xlu1 %v2003_v45 }
 0xa91   : > { %v5408_v26 = vpop.eup %5407 }
 0xa92   : > { %v2006_v46 = vsel %vm1975_vm10, %v5408_v26, 0.0 }
 0xa93   : > { %2007 = vadd.xlane.f32.xlu0 %v2006_v46 }
 0xa95   : > { %v5410_v36 = vpop.eup %5409 }
 0xa96   : > { %v2009_v47 = vsel %vm1975_vm10, %v5410_v36, 0.0 }
 0xa97   : > { %2010 = vadd.xlane.f32.xlu1 %v2009_v47 }
 0xaa5   : > { %v2002_v39 = vpop.xlane.xlu0 %2001 }
 0xaa6   : > { %5411 = vrcp.f32 %v2002_v39 }
 0xaa8   : > { %2119 = vrot.lane.b32.xlu1 %v5890_v41, %s6709_s8 }
 0xaa9   : > { %2166 = vrot.lane.b32.xlu0 %v5901_v49, %s6709_s8  ;;  %v2026_v48 = vpop.permute.xlu0 %2025  ;;  %s5424_s8 = scalar_lea.vmem %s4464_s30, 128 }
 0xaaa   : > { %5136 = vmatpush3.bf16.msra.mxu1 %v2026_v48  ;;  %p5425_p11 = scmp.ne.s32.totalorder %s4464_s30, %s5424_s8  ;;  %p5432_p1 = scmp.lt.s32.totalorder %s5430_s1, %s5424_s8 }
 0xaab   : > { %5147 = vmatprep.subr.bf16.mxu1 %v5486_v8 }
 0xaac   : > { %p5426_p12 = pnand %p5425_p11, %p5658_p5  ;;  %p5433_p2 = por %p5432_p1, %p5431_p0 }
 0xaae   : > { %p5427_p13 = pneg %p5426_p12 }
 0xab0   : > { %p5434_p3 = pnand %p5433_p2, %p5427_p13 }
 0xab3   : > { %v5412_v50 = vpop.eup %5411 }
 0xab4   : > { %v2016_v51 = vmul.f32 %v5412_v50, %v5404_v29 }
 0xab6   : > { %v2020_v53 = vpack.c.bf16 %v2016_v51, %v2016_v51 }
 0xab8   : > { %5138 = vmatmul.mubr.msk.bf16.vlgmr.msra.gmra.mxu1 %vm1975_vm10, %v2020_v53  ;;  %v4605_v53 = vld [vmem:[%s6652_s17] ss:$0 sm:$0xff] }
 0xab9   : > { %5149 = vmatprep.mubr.msk.bf16.mxu1 %vm5487_vm1, %v5486_v8 }
 0xb18   : > { %v2005_v54 = vpop.xlane.xlu1 %2004 }
 0xb19   : > { %5413 = vrcp.f32 %v2005_v54 }
 0xb1c   : > { %v2008_v55 = vpop.xlane.xlu0 %2007 }
 0xb1d   : > { %5415 = vrcp.f32 %v2008_v55 }
 0xb20   : > { %v2011_v41 = vpop.xlane.xlu1 %2010  ;;  %v2167_v63 = vpop.permute.xlu0 %2166 }
 0xb21   : > { %5417 = vrcp.f32 %v2011_v41 }
 0xb24   : > { %v2120_v56 = vpop.permute.xlu1 %2119 }
 0xb25   : > { %5148 = vmatpush3.bf16.msra.mxu1 %v2120_v56 }
 0xb26   : > { %v5414_v49 = vpop.eup %5413  ;;  %5159 = vmatprep.subr.bf16.mxu1 %v5486_v8 }
 0xb27   : > { %v2017_v57 = vmul.f32 %v5414_v49, %v5406_v44 }
 0xb29   : > { %v2021_v58 = vpack.c.bf16 %v2017_v57, %v2017_v57 }
 0xb2a   : > { %v5416_v59 = vpop.eup %5415 }
 0xb2b   : > { %5144 = vmatmul.mubr.msk.bf16.vlgmr.msra.gmra.mxu0 %vm1975_vm10, %v2021_v58  ;;  %v2018_v0 = vmul.f32 %v5416_v59, %v5408_v26 }
 0xb2c   : > { %5154 = vmatpush3.bf16.msra.mxu0 %v2167_v63  ;;  %5155 = vmatprep.mubr.msk.bf16.mxu0 %vm5487_vm1, %v5486_v8 }
 0xb2d   : > { %v2022_v1 = vpack.c.bf16 %v2018_v0, %v2018_v0  ;;  %5165 = vmatprep.subr.bf16.mxu0 %v5486_v8 }
 0xb2e   : > { %v5418_v3 = vpop.eup %5417 }
 0xb2f   : > { %5150 = vmatmul.mubr.msk.bf16.vlgmr.msra.gmra.mxu1 %vm1975_vm10, %v2022_v1  ;;  %v2019_v5 = vmul.f32 %v5418_v3, %v5410_v36  ;;  %v2473_v3 = vld [vmem:[%s6655_s20 + $0x80] sm:$0xff] }
 0xb30   : > { %5160 = vmatpush3.bf16.msra.mxu1 %v2224_v2  ;;  %5161 = vmatprep.mubr.msk.bf16.mxu1 %vm5487_vm1, %v5486_v8 }
 0xb31   : > { %v2023_v6 = vpack.c.bf16 %v2019_v5, %v2019_v5  ;;  %5171 = vmatprep.subr.bf16.mxu1 %v5486_v8 }
 0xb33   : > { %5156 = vmatmul.mubr.msk.bf16.vlgmr.msra.gmra.mxu0 %vm1975_vm10, %v2023_v6 }
 0xb34   : > { %5166 = vmatpush3.bf16.msra.mxu0 %v2270_v7  ;;  %5167 = vmatprep.mubr.msk.bf16.mxu0 %vm5487_vm1, %v5486_v8  ;;  %v2482_v7 = vld [vmem:[%s6655_s20 + $0xc8] sm:$0xff] }
 0xb35   : > { %5177 = vmatprep.subr.bf16.mxu0 %v5486_v8 }
 0xb78   : > { %v2065_v10 = vpop.f32.mrf.mxu1 }
 0xb79   : > { %v2212_v11 = vpack.c.bf16 %v2065_v10, %v2065_v10  ;;  %v2465_v10 = vld [vmem:[%s6655_s20 + $0x40] sm:$0xff] }
 0xb7a   : > { %v5139_v13 = vpop.f32.mrf.mxu1 }
 0xb7b   : > { %5162 = vmatmul.mubr.msk.bf16.vlgmr.msra.gmra.mxu1 %vm930_vm4, %v2212_v11  ;;  %v5493_v11 = vmov 0   ;;  %v4627_v13 = vcombine.high %v2474_v4, %v2482_v7 }
 0xb7c   : > { %v2068_v14 = vpop.f32.mrf.mxu1  ;;  %5172 = vmatpush3.bf16.msra.mxu1 %v2316_v12  ;;  %5173 = vmatprep.mubr.msk.bf16.mxu1 %vm5487_vm1, %v5486_v8  ;;  %v4626_v12 = vcombine.low %v2474_v4, %v2482_v7  ;;  %v2487_v4 = vld [vmem:[%s6655_s20 + $0xf0] sm:$0xff] }
 0xb7d   : > { %v4609_v14 = vcombine.high %v2457_v9, %v2465_v10 }
 0xb7e   : > { %v5140_v15 = vpop.f32.mrf.mxu1 }
 0xb7f   : > { %v2458_v15 = vld [vmem:[%s6655_s20 + $0x8] sm:$0xff] }
 0xbeb   : > { %v2112_v17 = vpop.f32.mrf.mxu0 }
 0xbec   : > { %v2213_v18 = vpack.c.bf16 %v2112_v17, %v2112_v17  ;;  %v4611_v17 = vcombine.high %v2458_v15, %v2466_v16 }
 0xbed   : > { %v5145_v20 = vpop.f32.mrf.mxu0 }
 0xbee   : > { %5168 = vmatmul.mubr.msk.bf16.vlgmr.msra.gmra.mxu0 %vm930_vm4, %v2213_v18  ;;  %v4608_v18 = vcombine.low %v2457_v9, %v2465_v10  ;;  %v2475_v20 = vld [vmem:[%s6655_s20 + $0x90] sm:$0xff] }
 0xbef   : > { %v2115_v21 = vpop.f32.mrf.mxu0  ;;  %v2159_v22 = vpop.f32.mrf.mxu1  ;;  %5178 = vmatpush3.bf16.msra.mxu0 %v2362_v19  ;;  %5179 = vmatprep.mubr.msk.bf16.mxu0 %vm5487_vm1, %v5486_v8  ;;  %v4610_v19 = vcombine.low %v2458_v15, %v2466_v16  ;;  %v2464_v15 = vld [vmem:[%s6655_s20 + $0x38] sm:$0xff] }
 0xbf0   : > { %v2214_v23 = vpack.c.bf16 %v2159_v22, %v2159_v22  ;;  %2789 = vmatprep.subr.bf16.mxu0 %v4627_v13  ;;  %v2483_v21 = vld [vmem:[%s6655_s20 + $0xd0] sm:$0xff]  ;;  %v2476_v22 = vld [vmem:[%s6655_s20 + $0x98] sm:$0xff] }
 0xbf1   : > { %v5146_v24 = vpop.f32.mrf.mxu0  ;;  %v5151_v25 = vpop.f32.mrf.mxu1  ;;  %v2463_v13 = vld [vmem:[%s6655_s20 + $0x30] sm:$0xff]  ;;  %v2472_v16 = vld [vmem:[%s6655_s20 + $0x78] sm:$0xff] }
 0xbf2   : > { %5174 = vmatmul.mubr.msk.bf16.vlgmr.msra.gmra.mxu1 %vm930_vm4, %v2214_v23  ;;  %v4629_v23 = vcombine.high %v2475_v20, %v2483_v21  ;;  %v2484_v24 = vld [vmem:[%s6655_s20 + $0xd8] sm:$0xff]  ;;  %v4628_v25 = vcombine.low %v2475_v20, %v2483_v21  ;;  %v4623_v20 = vcombine.high %v2464_v15, %v2472_v16 }
 0xbf3   : > { %v2162_v27 = vpop.f32.mrf.mxu1  ;;  %v2206_v28 = vpop.f32.mrf.mxu0  ;;  %2768 = vmatprep.mubr.bf16.mxu1 %v5493_v11 }
 0xbf4   : > { %v2215_v29 = vpack.c.bf16 %v2206_v28, %v2206_v28  ;;  %v4630_v27 = vcombine.low %v2476_v22, %v2484_v24  ;;  %v4631_v28 = vcombine.high %v2476_v22, %v2484_v24  ;;  %v4622_v22 = vcombine.low %v2464_v15, %v2472_v16  ;;  %v5252_v24 = vld [vmem:[%s6657_s22 + $0xf8] sm:$0xff]  }
 0xbf5   : > { %v5152_v30 = vpop.f32.mrf.mxu1  ;;  %v5157_v33 = vpop.f32.mrf.mxu0  ;;  %v2515_v15 = vsub.s32 5, %v5919_v60  ;;  %v2523_v16 = vsub.s32 7, %v5919_v60 }
 0xbf6   : > { %5180 = vmatmul.mubr.msk.bf16.vlgmr.msra.gmra.mxu0 %vm930_vm4, %v2215_v29 }
 0xbf7   : > { %v2209_v32 = vpop.f32.mrf.mxu0  ;;  %2809 = vmatprep.mubr.bf16.mxu0 %v5493_v11  ;;  %2790 = vmatpush1.bf16.msra.mxu0 %v4626_v12 }
 0xbf8   : > { %2791 = vmatprep.subr.bf16.mxu0 %v4611_v17 }
 0xbf9   : > { %v5158_v34 = vpop.f32.mrf.mxu0 }
 0xbfb   : > { %2792 = vmatpush1.bf16.msra.mxu0 %v4610_v19 }
 0xbfc   : > { %2871 = vmatprep.subr.bf16.mxu0 %v4631_v28  ;;  %v5255_v28 = vld [vmem:[%s6657_s22 + $0x70] sm:$0xff]  }
 0xc3b   : > { %v2260_v35 = vpop.f32.mrf.mxu1 }
 0xc3c   : > { %v2404_v45 = vsel %vm794_vm0, %v2260_v35, 0.0 }
 0xc3d   : > { %v5163_v37 = vpop.f32.mrf.mxu1 }
 0xc3f   : > { %v2263_v38 = vpop.f32.mrf.mxu1 }
 0xc41   : > { %v5164_v40 = vpop.f32.mrf.mxu1 }
 0xc42   : > { %v4606_v40 = vld [vmem:[%s6653_s18] ss:$0 sm:$0xff] }
 0xcae   : > { %v2306_v42 = vpop.f32.mrf.mxu0 }
 0xcaf   : > { %v2405_v43 = vsel %vm794_vm0, %v2306_v42, 0.0 }
 0xcb0   : > { %v5169_v8 = vpop.f32.mrf.mxu0  ;;  %v2406_v46 = vadd.f32 %v2405_v43, %v2404_v45  ;;  %v4607_v43 = vld [vmem:[%s6654_s19] ss:$0 sm:$0xff]  ;;  %v2467_v45 = vld [vmem:[%s6655_s20 + $0x50] sm:$0xff] }
 0xcb2   : > { %v2309_v31 = vpop.f32.mrf.mxu0  ;;  %v2352_v44 = vpop.f32.mrf.mxu1 }
 0xcb3   : > { %v2407_v26 = vsel %vm794_vm0, %v2352_v44, 0.0  ;;  %v2459_v44 = vld [vmem:[%s6655_s20 + $0x10] sm:$0xff] }
 0xcb4   : > { %v5170_v36 = vpop.f32.mrf.mxu0  ;;  %v5175_v47 = vpop.f32.mrf.mxu1  ;;  %v2408_v39 = vadd.f32 %v2407_v26, %v2406_v46  ;;  %v2460_v26 = vld [vmem:[%s6655_s20 + $0x18] sm:$0xff] }
 0xcb5   : > { %v2468_v46 = vld [vmem:[%s6655_s20 + $0x58] sm:$0xff] }
 0xcb6   : > { %v2355_v48 = vpop.f32.mrf.mxu1  ;;  %v2398_v50 = vpop.f32.mrf.mxu0 }
 0xcb7   : > { %v2409_v51 = vsel %vm794_vm0, %v2398_v50, 0.0  ;;  %v4615_v48 = vcombine.high %v2460_v26, %v2468_v46  ;;  %v2477_v50 = vld [vmem:[%s6655_s20 + $0xa0] sm:$0xff] }
 0xcb8   : > { %v2410_v54 = vadd.f32 %v2409_v51, %v2408_v39  ;;  %v5176_v55 = vpop.f32.mrf.mxu1  ;;  %v5181_v41 = vpop.f32.mrf.mxu0  ;;  %v4613_v39 = vcombine.high %v2459_v44, %v2467_v45  ;;  %v2485_v51 = vld [vmem:[%s6655_s20 + $0xe0] sm:$0xff] }
 0xcb9   : > { %v4612_v55 = vcombine.low %v2459_v44, %v2467_v45  ;;  %v4614_v41 = vcombine.low %v2460_v26, %v2468_v46  ;;  %v5270_v44 = vld [vmem:[%s6657_s22 + $0x98] sm:$0xff]   ;;  %v5271_v45 = vld [vmem:[%s6657_s22 + $0x50] sm:$0xff]  }
 0xcba   : > { %v2418_v56 = vadd.f32 %v4605_v53, %v2410_v54  ;;  %v2401_v49 = vpop.f32.mrf.mxu0  ;;  %v2478_v53 = vld [vmem:[%s6655_s20 + $0xa8] sm:$0xff]  ;;  %v5272_v26 = vld [vmem:[%s6657_s22 + $0xd0] sm:$0xff]  }
 0xcbb   : > { %v2486_v54 = vld [vmem:[%s6655_s20 + $0xe8] sm:$0xff]  ;;  %v5273_v46 = vld [vmem:[%s6657_s22 + $0x10] sm:$0xff]  }
 0xcbc   : > { %v5182_v57 = vpop.f32.mrf.mxu0  ;;  %v5992_v58 = vadd.f32 %v2418_v56, %v5833_v52  ;;  %v2481_v52 = vld [vmem:[%s6655_s20 + $0xc0] sm:$0xff]  ;;  %v4633_v56 = vcombine.high %v2477_v50, %v2485_v51  ;;  %v4635_v49 = vcombine.high %v2478_v53, %v2486_v54 }
 0xcbd   : > { %v4624_v5 = vcombine.low %v2473_v3, %v2481_v52  ;;  %v4625_v6 = vcombine.high %v2473_v3, %v2481_v52  ;;  %v2461_v57 = vld [vmem:[%s6655_s20 + $0x20] sm:$0xff]  ;;  %v2479_v52 = vld [vmem:[%s6655_s20 + $0xb0] sm:$0xff] }
 0xcbe   : > { %v2422_v59 = vsel %vm794_vm0, %v5992_v58, 0.0  ;;  %v4637_v10 = vcombine.high %v2479_v52, %v2487_v4  ;;  %v4636_v17 = vcombine.low %v2479_v52, %v2487_v4 }
 0xcbf   : > { %2423 = vadd.xlane.f32.xlu1 %v2422_v59  ;;  %2748 = vmatprep.subr.bf16.mxu1 %v4625_v6  ;;  %v2469_v59 = vld [vmem:[%s6655_s20 + $0x60] sm:$0xff]  ;;  %v2488_v6 = vld [vmem:[%s6655_s20 + $0xf8] sm:$0xff] }
 0xcc0   : > { %2749 = vmatpush1.bf16.msra.mxu1 %v4624_v5  ;;  %v2480_v5 = vld [vmem:[%s6655_s20 + $0xb8] sm:$0xff]  ;;  %v4616_v7 = vcombine.low %v2461_v57, %v2469_v59 }
 0xcc1   : > { %2750 = vmatprep.subr.bf16.mxu1 %v4609_v14  ;;  %v4639_v12 = vcombine.high %v2480_v5, %v2488_v6  ;;  %v2471_v14 = vld [vmem:[%s6655_s20 + $0x70] sm:$0xff] }
 0xcc2   : > { %v4621_v19 = vcombine.high %v2463_v13, %v2471_v14  ;;  %v4620_v21 = vcombine.low %v2463_v13, %v2471_v14 }
 0xcc4   : > { %2751 = vmatpush1.bf16.msra.mxu1 %v4608_v18  ;;  %v4638_v18 = vcombine.low %v2480_v5, %v2488_v6 }
 0xcc5   : > { %2830 = vmatprep.subr.bf16.mxu1 %v4629_v23  ;;  %v5251_v23 = vld [vmem:[%s6657_s22 + $0x78] sm:$0xff]  }
 0xd48   : > { %v2424_v62 = vpop.xlane.xlu1 %2423 }
 0xd49   : > { %v2425_v63 = vmul.f32 0.03125, %v2424_v62  ;;  %v2462_v62 = vld [vmem:[%s6655_s20 + $0x28] sm:$0xff] }
 0xd4b   : > { %v2426_v0 = vsub.f32 %v5992_v58, %v2425_v63  ;;  %v2470_v63 = vld [vmem:[%s6655_s20 + $0x68] sm:$0xff] }
 0xd4c   : > { %v4619_v3 = vcombine.high %v2462_v62, %v2470_v63  ;;  %v4618_v9 = vcombine.low %v2462_v62, %v2470_v63  ;;  %v2503_v62 = vsub.s32 2, %v5919_v60  ;;  %v6243_v63 = vld [vmem:[%s6656_s21] sm:$0xff] }
 0xd4d   : > { %v2427_v1 = vmul.f32 %v2426_v0, %v2426_v0  ;;  %v2447_v42 = vmul.f32 %v4606_v40, %v2426_v0  ;;  %v4632_v0 = vcombine.low %v2477_v50, %v2485_v51  ;;  %v5265_v40 = vld [vmem:[%s6657_s22 + $0x20] sm:$0xff]   ;;  %v5278_v50 = vld [vmem:[%s6657_s22 + $0x88] sm:$0xff]  }
 0xd4e   : > { %v5279_v51 = vld [vmem:[%s6657_s22 + $0x40] sm:$0xff]  }
 0xd4f   : > { %v2428_v2 = vsel %vm794_vm0, %v2427_v1, 0.0  ;;  %v4634_v1 = vcombine.low %v2478_v53, %v2486_v54  ;;  %v5280_v53 = vld [vmem:[%s6657_s22 + $0xc0] sm:$0xff]  }
 0xd50   : > { %2429 = vadd.xlane.f32.xlu0 %v2428_v2  ;;  %v4617_v2 = vcombine.high %v2461_v57, %v2469_v59  ;;  %v5281_v54 = vld [vmem:[%s6657_s22] sm:$0xff]   ;;  %v6232_v57 = vld [vmem:[%s6656_s21 + $0x8] sm:$0xff] }
 0xdd9   : > { %v2430_v29 = vpop.xlane.xlu0 %2429 }
 0xdda   : > { %v2431_v30 = vmul.f32 0.032258064, %v2430_v29  ;;  %v5257_v29 = vld [vmem:[%s6657_s22 + $0x30] sm:$0xff]  }
 0xddc   : > { %5419 = vrsqrt.f32 %v2431_v30  ;;  %vm2434_vm11 = vcmp.eq.f32.partialorder %v2431_v30, inf  ;;  %v2437_v34 = vand.u32 2147483648, %v2431_v30  ;;  %vm2436_vm12 = vcmp.eq.f32.partialorder %v2431_v30, 0.0 }
 0xde9   : > { %v5420_v33 = vpop.eup %5419 }
 0xdea   : > { %v2433_v32 = vmul.f32 %v5420_v33, %v2431_v30  ;;  %v5259_v33 = vld [vmem:[%s6657_s22 + $0x68] sm:$0xff]  }
 0xdec   : > { %v2435_v35 = vsel %vm2434_vm11, %v2431_v30, %v2433_v32  ;;  %v5258_v30 = vld [vmem:[%s6657_s22 + $0xb0] sm:$0xff]   ;;  %v5260_v32 = vld [vmem:[%s6657_s22 + $0xe8] sm:$0xff]  }
 0xded   : > { %v2438_v37 = vsel %vm2436_vm12, %v2437_v34, %v2435_v35  ;;  %v5261_v34 = vld [vmem:[%s6657_s22 + $0x28] sm:$0xff]  }
 0xdee   : > { %v2439_v38 = vadd.f32 1e-06, %v2438_v37  ;;  %v5262_v35 = vld [vmem:[%s6657_s22 + $0xa8] sm:$0xff]   ;;  %v5263_v37 = vld [vmem:[%s6657_s22 + $0x60] sm:$0xff]  }
 0xdf0   : > { %5421 = vrcp.f32 %v2439_v38  ;;  %v5264_v38 = vld [vmem:[%s6657_s22 + $0xe0] sm:$0xff]  }
 0xdfd   : > { %v5422_v8 = vpop.eup %5421 }
 0xdfe   : > { %v2448_v31 = vmul.f32 %v5422_v8, %v2447_v42  ;;  %v5266_v42 = vld [vmem:[%s6657_s22 + $0xa0] sm:$0xff]   ;;  %v5267_v8 = vld [vmem:[%s6657_s22 + $0x58] sm:$0xff]  }
 0xe00   : > { %v2455_v36 = vadd.f32 %v4607_v43, %v2448_v31  ;;  %v5268_v43 = vld [vmem:[%s6657_s22 + $0xd8] sm:$0xff]  }
 0xe01   : > { %v5269_v31 = vld [vmem:[%s6657_s22 + $0x18] sm:$0xff]  }
 0xe02   : > { %v6054_v47 = vpack.c.bf16 %v2455_v36, %v2455_v36  ;;  %v5274_v36 = vld [vmem:[%s6657_s22 + $0x90] sm:$0xff]  }
 0xe04   : > { %4640 = vmatmul.mubr.msk.bf16.vlgmr.msra.gmra.mxu1 %vm794_vm0, %v6054_v47  ;;  %4641 = vmatmul.mubr.msk.bf16.vlgmr.msra.gmra.mxu0 %vm794_vm0, %v6054_v47 }
 0xe05   : > { %2831 = vmatpush1.bf16.msra.mxu1 %v4628_v25  ;;  %2872 = vmatpush1.bf16.msra.mxu0 %v4630_v27  ;;  %v5253_v25 = vld [vmem:[%s6657_s22 + $0x38] sm:$0xff]  }
 0xe06   : > { %2832 = vmatprep.subr.bf16.mxu1 %v4613_v39  ;;  %2873 = vmatprep.subr.bf16.mxu0 %v4615_v48  ;;  %v5254_v27 = vld [vmem:[%s6657_s22 + $0xb8] sm:$0xff]   ;;  %v5276_v39 = vld [vmem:[%s6657_s22 + $0xc8] sm:$0xff]  }
 0xe07   : > { %2850 = vmatprep.mubr.bf16.mxu1 %v5493_v11  ;;  %2891 = vmatprep.mubr.bf16.mxu0 %v5493_v11  ;;  %v5277_v48 = vld [vmem:[%s6657_s22 + $0x8] sm:$0xff]  }
 0xe09   : > { %2833 = vmatpush1.bf16.msra.mxu1 %v4612_v55  ;;  %2874 = vmatpush1.bf16.msra.mxu0 %v4614_v41  ;;  %v5282_v55 = vld [vmem:[%s6657_s22 + $0x80] sm:$0xff]   ;;  %v5283_v41 = vld [vmem:[%s6657_s22 + $0x178] sm:$0xff]  }
 0xe0a   : > { %2912 = vmatprep.subr.bf16.mxu1 %v4633_v56  ;;  %2953 = vmatprep.subr.bf16.mxu0 %v4635_v49  ;;  %v5284_v56 = vld [vmem:[%s6657_s22 + $0x1f8] sm:$0xff]   ;;  %v2519_v49 = vsub.s32 6, %v5919_v60 }
 0xe0c   : > { %4642 = vmatmul.mubr.msk.bf16.vlgmr.msra.gmra.mxu1 %vm794_vm0, %v6054_v47  ;;  %4643 = vmatmul.mubr.msk.bf16.vlgmr.msra.gmra.mxu0 %vm794_vm0, %v6054_v47  ;;  %v6237_v59 = vrot.slane %v6232_v57, %v2519_v49 }
 0xe0d   : > { %2913 = vmatpush1.bf16.msra.mxu1 %v4632_v0  ;;  %2954 = vmatpush1.bf16.msra.mxu0 %v4634_v1  ;;  %v2499_v0 = vsub.s32 1, %v5919_v60  ;;  %v2507_v1 = vsub.s32 3, %v5919_v60 }
 0xe0e   : > { %2914 = vmatprep.subr.bf16.mxu1 %v4617_v2  ;;  %2955 = vmatprep.subr.bf16.mxu0 %v4619_v3  ;;  %v2496_v2 = vrot.slane %v6243_v63, %v5922_v61  ;;  %v2504_v3 = vrot.slane %v6243_v63, %v2503_v62 }
 0xe0f   : > { %2932 = vmatprep.mubr.bf16.mxu1 %v5493_v11  ;;  %2973 = vmatprep.mubr.bf16.mxu0 %v5493_v11  ;;  %v2500_v52 = vrot.slane %v6243_v63, %v2499_v0  ;;  %v2508_v4 = vrot.slane %v6243_v63, %v2507_v1 }
 0xe11   : > { %2915 = vmatpush1.bf16.msra.mxu1 %v4616_v7  ;;  %2956 = vmatpush1.bf16.msra.mxu0 %v4618_v9 }
 0xe12   : > { %2994 = vmatprep.subr.bf16.mxu1 %v4637_v10  ;;  %3035 = vmatprep.subr.bf16.mxu0 %v4639_v12 }
 0xe14   : > { %4644 = vmatmul.mubr.msk.bf16.vlgmr.msra.gmra.mxu1 %vm794_vm0, %v6054_v47  ;;  %4645 = vmatmul.mubr.msk.bf16.vlgmr.msra.gmra.mxu0 %vm794_vm0, %v6054_v47 }
 0xe15   : > { %2995 = vmatpush1.bf16.msra.mxu1 %v4636_v17  ;;  %3036 = vmatpush1.bf16.msra.mxu0 %v4638_v18 }
 0xe16   : > { %2996 = vmatprep.subr.bf16.mxu1 %v4621_v19  ;;  %3037 = vmatprep.subr.bf16.mxu0 %v4623_v20 }
 0xe17   : > { %3014 = vmatprep.mubr.bf16.mxu1 %v5493_v11  ;;  %3055 = vmatprep.mubr.bf16.mxu0 %v5493_v11  ;;  %v5256_v11 = vld [vmem:[%s6657_s22 + $0xf0] sm:$0xff]  }
 0xe19   : > { %2997 = vmatpush1.bf16.msra.mxu1 %v4620_v21  ;;  %3038 = vmatpush1.bf16.msra.mxu0 %v4622_v22 }
 0xe1a   : > { %4839 = vmatprep.subr.bf16.mxu1 %v5251_v23  ;;  %4861 = vmatprep.subr.bf16.mxu0 %v5252_v24 }
 0xe1c   : > { %4646 = vmatmul.mubr.msk.bf16.vlgmr.msra.gmra.mxu1 %vm794_vm0, %v6054_v47  ;;  %4647 = vmatmul.mubr.msk.bf16.vlgmr.msra.gmra.mxu0 %vm794_vm0, %v6054_v47  ;;  %v5275_v47 = vld [vmem:[%s6657_s22 + $0x48] sm:$0xff]  }
 0xe1d   : > { %4840 = vmatpush3.bf16.msra.mxu1 %v5253_v25  ;;  %4862 = vmatpush3.bf16.msra.mxu0 %v5254_v27 }
 0xe1e   : > { %4841 = vmatprep.subr.bf16.mxu1 %v5255_v28  ;;  %4863 = vmatprep.subr.bf16.mxu0 %v5256_v11  ;;  %v2516_v28 = vrot.slane %v6243_v63, %v2515_v15  ;;  %v2524_v11 = vrot.slane %v6243_v63, %v2523_v16 }
 0xe21   : > { %4842 = vmatpush3.bf16.msra.mxu1 %v5257_v29  ;;  %4864 = vmatpush3.bf16.msra.mxu0 %v5258_v30  ;;  %v5285_v29 = vld [vmem:[%s6657_s22 + $0x138] sm:$0xff]  }
 0xe22   : > { %4843 = vmatprep.subr.bf16.mxu1 %v5259_v33  ;;  %4865 = vmatprep.subr.bf16.mxu0 %v5260_v32  ;;  %v5286_v30 = vld [vmem:[%s6657_s22 + $0x1b8] sm:$0xff]  }
 0xe25   : > { %4844 = vmatpush3.bf16.msra.mxu1 %v5261_v34  ;;  %4866 = vmatpush3.bf16.msra.mxu0 %v5262_v35 }
 0xe26   : > { %4845 = vmatprep.subr.bf16.mxu1 %v5263_v37  ;;  %4867 = vmatprep.subr.bf16.mxu0 %v5264_v38  ;;  %v5287_v37 = vld [vmem:[%s6657_s22 + $0x170] sm:$0xff]  }
 0xe27   : > { %v5288_v38 = vld [vmem:[%s6657_s22 + $0x1f0] sm:$0xff]  }
 0xe29   : > { %4846 = vmatpush3.bf16.msra.mxu1 %v5265_v40  ;;  %4868 = vmatpush3.bf16.msra.mxu0 %v5266_v42 }
 0xe2a   : > { %4847 = vmatprep.subr.bf16.mxu1 %v5267_v8  ;;  %4869 = vmatprep.subr.bf16.mxu0 %v5268_v43 }
 0xe2d   : > { %4848 = vmatpush3.bf16.msra.mxu1 %v5269_v31  ;;  %4870 = vmatpush3.bf16.msra.mxu0 %v5270_v44  ;;  %v5289_v31 = vld [vmem:[%s6657_s22 + $0x130] sm:$0xff]  }
 0xe2e   : > { %4849 = vmatprep.subr.bf16.mxu1 %v5271_v45  ;;  %4871 = vmatprep.subr.bf16.mxu0 %v5272_v26  ;;  %v5290_v44 = vld [vmem:[%s6657_s22 + $0x1b0] sm:$0xff]  }
 0xe31   : > { %4850 = vmatpush3.bf16.msra.mxu1 %v5273_v46  ;;  %4872 = vmatpush3.bf16.msra.mxu0 %v5274_v36  ;;  %v5291_v46 = vld [vmem:[%s6657_s22 + $0x168] sm:$0xff]  }
 0xe32   : > { %4851 = vmatprep.subr.bf16.mxu1 %v5275_v47  ;;  %4873 = vmatprep.subr.bf16.mxu0 %v5276_v39  ;;  %v5292_v36 = vld [vmem:[%s6657_s22 + $0x1e8] sm:$0xff]  }
 0xe35   : > { %4852 = vmatpush3.bf16.msra.mxu1 %v5277_v48  ;;  %4874 = vmatpush3.bf16.msra.mxu0 %v5278_v50 }
 0xe36   : > { %4853 = vmatprep.subr.bf16.mxu1 %v5279_v51  ;;  %4875 = vmatprep.subr.bf16.mxu0 %v5280_v53 }
 0xe39   : > { %4854 = vmatpush3.bf16.msra.mxu1 %v5281_v54  ;;  %4876 = vmatpush3.bf16.msra.mxu0 %v5282_v55  ;;  %v5293_v54 = vld [vmem:[%s6657_s22 + $0x128] sm:$0xff]  }
 0xe3a   : > { %4883 = vmatprep.subr.bf16.mxu1 %v5283_v41  ;;  %4905 = vmatprep.subr.bf16.mxu0 %v5284_v56  ;;  %v5294_v55 = vld [vmem:[%s6657_s22 + $0x1a8] sm:$0xff]  }
 0xec4   : > { %v2770_v5 = vpop.f32.mrf.mxu1  ;;  %v2811_v6 = vpop.f32.mrf.mxu0 }
 0xec5   : > { %v2771_v7 = vadd.f32 %v2770_v5, %v2496_v2  ;;  %v2812_v9 = vadd.f32 %v2811_v6, %v2504_v3  ;;  %v5295_v2 = vld [vmem:[%s6657_s22 + $0x160] sm:$0xff]   ;;  %v2511_v5 = vsub.s32 4, %v5919_v60 }
 0xec6   : > { %v2772_v10 = vpop.f32.mrf.mxu1  ;;  %v2813_v12 = vpop.f32.mrf.mxu0  ;;  %v5296_v3 = vld [vmem:[%s6657_s22 + $0x1e0] sm:$0xff]  }
 0xec7   : > { %v2773_v13 = vadd.f32 %v2772_v10, %v2500_v52  ;;  %v2814_v14 = vadd.f32 %v2813_v12, %v2508_v4  ;;  %v3064_v17 = vmax.f32 %v2771_v7, 0.0  ;;  %v3066_v18 = vmax.f32 %v2812_v9, 0.0  ;;  %v5297_v6 = vld [vmem:[%s6657_s22 + $0x120] sm:$0xff]   ;;  %v5299_v12 = vld [vmem:[%s6657_s22 + $0x158] sm:$0xff]  }
 0xec8   : > { %v2774_v19 = vpop.f32.mrf.mxu1  ;;  %v2815_v20 = vpop.f32.mrf.mxu0  ;;  %v5298_v7 = vld [vmem:[%s6657_s22 + $0x1a0] sm:$0xff]  }
 0xec9   : > { %v3065_v21 = vmax.f32 %v2773_v13, 0.0  ;;  %v3067_v22 = vmax.f32 %v2814_v14, 0.0  ;;  %v3080_v33 = vpack.c.bf16 %v3064_v17, %v3064_v17  ;;  %v3082_v32 = vpack.c.bf16 %v3066_v18, %v3066_v18  ;;  %v5300_v13 = vld [vmem:[%s6657_s22 + $0x1d8] sm:$0xff]  }
 0xeca   : > { %v2775_v23 = vpop.f32.mrf.mxu1  ;;  %v2816_v24 = vpop.f32.mrf.mxu0  ;;  %v2544_v14 = vrot.slane %v6232_v57, %v2511_v5  ;;  %v5301_v19 = vld [vmem:[%s6657_s22 + $0x118] sm:$0xff]  }
 0xecb   : > { %v3081_v25 = vpack.c.bf16 %v3065_v21, %v3065_v21  ;;  %v3083_v27 = vpack.c.bf16 %v3067_v22, %v3067_v22  ;;  %v5302_v20 = vld [vmem:[%s6657_s22 + $0x198] sm:$0xff]   ;;  %v5303_v23 = vld [vmem:[%s6657_s22 + $0x150] sm:$0xff]  }
 0xecc   : > { %v6272_v34 = vpop.f32.mrf.mxu1  ;;  %v6274_v35 = vpop.f32.mrf.mxu0  ;;  %v5304_v24 = vld [vmem:[%s6657_s22 + $0x1d0] sm:$0xff]  }
 0xecd   : > { %4159 = vmatprep.mubr.bf16.mxu1 %v3081_v25  ;;  %4199 = vmatprep.mubr.bf16.mxu0 %v3083_v27 }
 0xece   : > { %v2854_v40 = vpop.f32.mrf.mxu1  ;;  %v2895_v42 = vpop.f32.mrf.mxu0  ;;  %4160 = vmatmul.mubr.bf16.vlgmr.msra.gmra.mxu1 %v3080_v33  ;;  %4200 = vmatmul.mubr.bf16.vlgmr.msra.gmra.mxu0 %v3082_v32  ;;  %v2512_v33 = vrot.slane %v6243_v63, %v2511_v5 }
 0xecf   : > { %v2855_v8 = vadd.f32 %v2854_v40, %v2516_v28  ;;  %v2896_v43 = vadd.f32 %v2895_v42, %v2524_v11  ;;  %4884 = vmatpush3.bf16.msra.mxu1 %v5285_v29  ;;  %4906 = vmatpush3.bf16.msra.mxu0 %v5286_v30  ;;  %v5305_v29 = vld [vmem:[%s6657_s22 + $0x110] sm:$0xff]   ;;  %v5308_v40 = vld [vmem:[%s6657_s22 + $0x1c8] sm:$0xff]   ;;  %v2532_v42 = vrot.slane %v6232_v57, %v2499_v0 }
 0xed0   : > { %v2856_v45 = vpop.f32.mrf.mxu1  ;;  %v2897_v26 = vpop.f32.mrf.mxu0  ;;  %4885 = vmatprep.subr.bf16.mxu1 %v5287_v37  ;;  %4907 = vmatprep.subr.bf16.mxu0 %v5288_v38  ;;  %v5306_v30 = vld [vmem:[%s6657_s22 + $0x190] sm:$0xff]   ;;  %v5307_v38 = vld [vmem:[%s6657_s22 + $0x148] sm:$0xff]  }
 0xed1   : > { %v3069_v47 = vmax.f32 %v2855_v8, 0.0  ;;  %v3071_v39 = vmax.f32 %v2896_v43, 0.0  ;;  %v5309_v43 = vld [vmem:[%s6657_s22 + $0x108] sm:$0xff]   ;;  %v5312_v45 = vld [vmem:[%s6657_s22 + $0x1c0] sm:$0xff]  }
 0xed2   : > { %v2857_v48 = vpop.f32.mrf.mxu1  ;;  %v2898_v50 = vpop.f32.mrf.mxu0 }
 0xed3   : > { %v3085_v51 = vpack.c.bf16 %v3069_v47, %v3069_v47  ;;  %v3087_v53 = vpack.c.bf16 %v3071_v39, %v3071_v39  ;;  %4886 = vmatpush3.bf16.msra.mxu1 %v5289_v31  ;;  %4908 = vmatpush3.bf16.msra.mxu0 %v5290_v44  ;;  %v5310_v31 = vld [vmem:[%s6657_s22 + $0x188] sm:$0xff]   ;;  %v2853_v44 = vadd.f32 %v6272_v34, %v2512_v33  ;;  %v5313_v34 = vld [vmem:[%s6657_s22 + $0x100] sm:$0xff]   ;;  %v5315_v39 = vld [vmem:[%s6657_s22 + $0x278] sm:$0xff]  }
 0xed4   : > { %v6300_v41 = vpop.f32.mrf.mxu1  ;;  %v6302_v56 = vpop.f32.mrf.mxu0  ;;  %4887 = vmatprep.subr.bf16.mxu1 %v5291_v46  ;;  %4909 = vmatprep.subr.bf16.mxu0 %v5292_v36  ;;  %v5316_v48 = vld [vmem:[%s6657_s22 + $0x2f8] sm:$0xff]   ;;  %v2528_v33 = vrot.slane %v6232_v57, %v5922_v61  ;;  %v2548_v61 = vrot.slane %v6232_v57, %v2515_v15  ;;  %v5343_v15 = vld [vmem:[%s6657_s22 + $0x240] sm:$0xff]  }
 0xed5   : > { %4239 = vmatprep.mubr.bf16.mxu1 %v3085_v51  ;;  %4279 = vmatprep.mubr.bf16.mxu0 %v3087_v53  ;;  %v3068_v36 = vmax.f32 %v2853_v44, 0.0  ;;  %v5317_v53 = vld [vmem:[%s6657_s22 + $0x238] sm:$0xff]  }
 0xed6   : > { %v2936_v52 = vpop.f32.mrf.mxu1  ;;  %v2977_v4 = vpop.f32.mrf.mxu0 }
 0xed7   : > { %4888 = vmatpush3.bf16.msra.mxu1 %v5293_v54  ;;  %4910 = vmatpush3.bf16.msra.mxu0 %v5294_v55  ;;  %v2937_v26 = vadd.f32 %v2936_v52, %v2532_v42  ;;  %v3084_v54 = vpack.c.bf16 %v3068_v36, %v3068_v36  ;;  %v5319_v52 = vld [vmem:[%s6657_s22 + $0x270] sm:$0xff]   ;;  %v5341_v42 = vld [vmem:[%s6657_s22 + $0x208] sm:$0xff]  }
 0xed8   : > { %v2938_v9 = vpop.f32.mrf.mxu1  ;;  %v2979_v10 = vpop.f32.mrf.mxu0  ;;  %4889 = vmatprep.subr.bf16.mxu1 %v5295_v2  ;;  %4911 = vmatprep.subr.bf16.mxu0 %v5296_v3  ;;  %v5318_v2 = vld [vmem:[%s6657_s22 + $0x2b8] sm:$0xff]  }
 0xed9   : > { %v3073_v50 = vmax.f32 %v2937_v26, 0.0  ;;  %v5323_v9 = vld [vmem:[%s6657_s22 + $0x268] sm:$0xff]  }
 0xeda   : > { %v2939_v17 = vpop.f32.mrf.mxu1  ;;  %v2980_v18 = vpop.f32.mrf.mxu0  ;;  %v5324_v10 = vld [vmem:[%s6657_s22 + $0x2e8] sm:$0xff]  }
 0xedb   : > { %4890 = vmatpush3.bf16.msra.mxu1 %v5297_v6  ;;  %4912 = vmatpush3.bf16.msra.mxu0 %v5298_v7  ;;  %v3089_v3 = vpack.c.bf16 %v3073_v50, %v3073_v50  ;;  %v5321_v6 = vld [vmem:[%s6657_s22 + $0x230] sm:$0xff]   ;;  %v5328_v17 = vld [vmem:[%s6657_s22 + $0x2e0] sm:$0xff]   ;;  %v5356_v50 = vld [vmem:[%s6657_s22 + $0x3e8] sm:$0xff]  }
 0xedc   : > { %v3016_v21 = vpop.f32.mrf.mxu1  ;;  %v3057_v22 = vpop.f32.mrf.mxu0  ;;  %4891 = vmatprep.subr.bf16.mxu1 %v5299_v12  ;;  %4913 = vmatprep.subr.bf16.mxu0 %v5300_v13  ;;  %v5322_v7 = vld [vmem:[%s6657_s22 + $0x2b0] sm:$0xff]   ;;  %v5325_v12 = vld [vmem:[%s6657_s22 + $0x228] sm:$0xff]   ;;  %v5329_v18 = vld [vmem:[%s6657_s22 + $0x220] sm:$0xff]  }
 0xedd   : > { %v6336_v25 = vadd.f32 %v3016_v21, %v2544_v14  ;;  %v6339_v27 = vadd.f32 %v3057_v22, %v6237_v59  ;;  %v2520_v59 = vrot.slane %v6243_v63, %v2519_v49  ;;  %v2540_v49 = vrot.slane %v6232_v57, %v2507_v1  ;;  %v5311_v1 = vld [vmem:[%s6657_s22 + $0x140] sm:$0xff]   ;;  %v5326_v13 = vld [vmem:[%s6657_s22 + $0x2a8] sm:$0xff]   ;;  %v5332_v21 = vld [vmem:[%s6657_s22 + $0x2d8] sm:$0xff]  }
 0xede   : > { %v6341_v28 = vpop.f32.mrf.mxu1  ;;  %v6343_v11 = vpop.f32.mrf.mxu0  ;;  %v5327_v14 = vld [vmem:[%s6657_s22 + $0x260] sm:$0xff]   ;;  %v5333_v22 = vld [vmem:[%s6657_s22 + $0x218] sm:$0xff]  }
 0xedf   : > { %4892 = vmatpush3.bf16.msra.mxu1 %v5301_v19  ;;  %4914 = vmatpush3.bf16.msra.mxu0 %v5302_v20  ;;  %v2894_v0 = vadd.f32 %v6274_v35, %v2520_v59  ;;  %v2978_v46 = vadd.f32 %v2977_v4, %v2540_v49  ;;  %v5314_v35 = vld [vmem:[%s6657_s22 + $0x180] sm:$0xff]   ;;  %v5320_v4 = vld [vmem:[%s6657_s22 + $0x2f0] sm:$0xff]   ;;  %v5331_v20 = vld [vmem:[%s6657_s22 + $0x258] sm:$0xff]  }
 0xee0   : > { %v3020_v32 = vpop.f32.mrf.mxu1  ;;  %v3061_v37 = vpop.f32.mrf.mxu0  ;;  %4893 = vmatprep.subr.bf16.mxu1 %v5303_v23  ;;  %4915 = vmatprep.subr.bf16.mxu0 %v5304_v24  ;;  %v5330_v19 = vld [vmem:[%s6657_s22 + $0x2a0] sm:$0xff]   ;;  %v5334_v23 = vld [vmem:[%s6657_s22 + $0x298] sm:$0xff]   ;;  %v5335_v24 = vld [vmem:[%s6657_s22 + $0x250] sm:$0xff]  }
 0xee1   : > { %v3070_v47 = vmax.f32 %v2894_v0, 0.0  ;;  %v3075_v51 = vmax.f32 %v2978_v46, 0.0  ;;  %v5338_v59 = vld [vmem:[%s6657_s22 + $0x290] sm:$0xff]   ;;  %v5339_v32 = vld [vmem:[%s6657_s22 + $0x248] sm:$0xff]   ;;  %v2536_v37 = vrot.slane %v6232_v57, %v2503_v62  ;;  %v2935_v62 = vadd.f32 %v6300_v41, %v2528_v33  ;;  %v5349_v0 = vld [vmem:[%s6657_s22 + $0x338] sm:$0xff]  }
 0xee2   : > { %v3021_v63 = vpop.f32.mrf.mxu1  ;;  %v3062_v8 = vpop.f32.mrf.mxu0  ;;  %v5342_v49 = vld [vmem:[%s6657_s22 + $0x288] sm:$0xff]   ;;  %v5351_v46 = vld [vmem:[%s6657_s22 + $0x370] sm:$0xff]  }
 0xee3   : > { %4894 = vmatpush3.bf16.msra.mxu1 %v5305_v29  ;;  %4916 = vmatpush3.bf16.msra.mxu0 %v5306_v30  ;;  %v3086_v55 = vpack.c.bf16 %v3070_v47, %v3070_v47  ;;  %v3091_v5 = vpack.c.bf16 %v3075_v51, %v3075_v51  ;;  %v5336_v29 = vld [vmem:[%s6657_s22 + $0x2d0] sm:$0xff]   ;;  %v2976_v60 = vadd.f32 %v6302_v56, %v2536_v37  ;;  %v5345_v63 = vld [vmem:[%s6657_s22 + $0x200] sm:$0xff]   ;;  %v3072_v8 = vmax.f32 %v2935_v62, 0.0  ;;  %v5357_v51 = vld [vmem:[%s6657_s22 + $0x328] sm:$0xff]  }
 0xee4   : > { %4895 = vmatprep.subr.bf16.mxu1 %v5307_v38  ;;  %4917 = vmatprep.subr.bf16.mxu0 %v5308_v40  ;;  %v5337_v30 = vld [vmem:[%s6657_s22 + $0x210] sm:$0xff]   ;;  %v5340_v38 = vld [vmem:[%s6657_s22 + $0x2c8] sm:$0xff]   ;;  %v2556_v40 = vrot.slane %v6232_v57, %v2523_v16  ;;  %v5344_v57 = vld [vmem:[%s6657_s22 + $0x2c0] sm:$0xff]   ;;  %v3019_v16 = vadd.f32 %v6341_v28, %v2548_v61 }
 0xee5   : > { %v5346_v56 = vld [vmem:[%s6657_s22 + $0x280] sm:$0xff]   ;;  %v5348_v28 = vld [vmem:[%s6657_s22 + $0x3f8] sm:$0xff]   ;;  %v5353_v47 = vld [vmem:[%s6657_s22 + $0x330] sm:$0xff]  }
 0xee6   : > { %v3060_v41 = vadd.f32 %v6343_v11, %v2556_v40  ;;  %v3077_v11 = vmax.f32 %v3019_v16, 0.0 }
 0xee7   : > { %4896 = vmatpush3.bf16.msra.mxu1 %v5309_v43  ;;  %4918 = vmatpush3.bf16.msra.mxu0 %v5310_v31  ;;  %v5347_v43 = vld [vmem:[%s6657_s22 + $0x378] sm:$0xff]   ;;  %v3074_v31 = vmax.f32 %v2976_v60, 0.0 }
 0xee8   : > { %4897 = vmatprep.subr.bf16.mxu1 %v5311_v1  ;;  %4919 = vmatprep.subr.bf16.mxu0 %v5312_v45  ;;  %v3079_v44 = vmax.f32 %v3060_v41, 0.0  ;;  %v3088_v1 = vpack.c.bf16 %v3072_v8, %v3072_v8  ;;  %v5350_v45 = vld [vmem:[%s6657_s22 + $0x3b8] sm:$0xff]  }
 0xee9   : > { %v3090_v26 = vpack.c.bf16 %v3074_v31, %v3074_v31 }
 0xeea   : > { %v3095_v36 = vpack.c.bf16 %v3079_v44, %v3079_v44 }
 0xeeb   : > { %4898 = vmatpush3.bf16.msra.mxu1 %v5313_v34  ;;  %4920 = vmatpush3.bf16.msra.mxu0 %v5314_v35  ;;  %v3093_v34 = vpack.c.bf16 %v3077_v11, %v3077_v11  ;;  %v5352_v35 = vld [vmem:[%s6657_s22 + $0x3f0] sm:$0xff]  }
 0xeec   : > { %4927 = vmatprep.subr.bf16.mxu1 %v5315_v39  ;;  %4949 = vmatprep.subr.bf16.mxu0 %v5316_v48  ;;  %v5354_v39 = vld [vmem:[%s6657_s22 + $0x3b0] sm:$0xff]   ;;  %v5355_v48 = vld [vmem:[%s6657_s22 + $0x368] sm:$0xff]  }
 0xeee   : > { %4240 = vmatmul.mubr.bf16.vlgmr.msra.gmra.mxu1 %v3084_v54  ;;  %4280 = vmatmul.mubr.bf16.vlgmr.msra.gmra.mxu0 %v3086_v55  ;;  %v5359_v54 = vld [vmem:[%s6657_s22 + $0x360] sm:$0xff]  }
 0xeef   : > { %4928 = vmatpush3.bf16.msra.mxu1 %v5317_v53  ;;  %4319 = vmatprep.mubr.bf16.mxu1 %v3089_v3  ;;  %v5358_v53 = vld [vmem:[%s6657_s22 + $0x3a8] sm:$0xff]   ;;  %v5360_v55 = vld [vmem:[%s6657_s22 + $0x3e0] sm:$0xff]  }
 0xef0   : > { %4950 = vmatpush3.bf16.msra.mxu0 %v5318_v2  ;;  %4359 = vmatprep.mubr.bf16.mxu0 %v3091_v5  ;;  %v5361_v2 = vld [vmem:[%s6657_s22 + $0x320] sm:$0xff]   ;;  %v5365_v5 = vld [vmem:[%s6657_s22 + $0x318] sm:$0xff]  }
 0xef1   : > { %4929 = vmatprep.subr.bf16.mxu1 %v5319_v52  ;;  %4951 = vmatprep.subr.bf16.mxu0 %v5320_v4  ;;  %v5362_v3 = vld [vmem:[%s6657_s22 + $0x3a0] sm:$0xff]   ;;  %v5363_v52 = vld [vmem:[%s6657_s22 + $0x358] sm:$0xff]  }
 0xef2   : > { %v5364_v4 = vld [vmem:[%s6657_s22 + $0x3d8] sm:$0xff]  }
 0xef3   : > { %4930 = vmatpush3.bf16.msra.mxu1 %v5321_v6  ;;  %v5366_v6 = vld [vmem:[%s6657_s22 + $0x398] sm:$0xff]  }
 0xef4   : > { %4952 = vmatpush3.bf16.msra.mxu0 %v5322_v7  ;;  %4931 = vmatprep.subr.bf16.mxu1 %v5323_v9  ;;  %v5367_v7 = vld [vmem:[%s6657_s22 + $0x350] sm:$0xff]  }
 0xef5   : > { %4953 = vmatprep.subr.bf16.mxu0 %v5324_v10  ;;  %v5368_v9 = vld [vmem:[%s6657_s22 + $0x3d0] sm:$0xff]  }
 0xef6   : > { %v5369_v10 = vld [vmem:[%s6657_s22 + $0x310] sm:$0xff]  }
 0xef7   : > { %4932 = vmatpush3.bf16.msra.mxu1 %v5325_v12  ;;  %v5370_v12 = vld [vmem:[%s6657_s22 + $0x390] sm:$0xff]  }
 0xef8   : > { %4954 = vmatpush3.bf16.msra.mxu0 %v5326_v13  ;;  %4933 = vmatprep.subr.bf16.mxu1 %v5327_v14  ;;  %v5371_v13 = vld [vmem:[%s6657_s22 + $0x348] sm:$0xff]  }
 0xef9   : > { %4955 = vmatprep.subr.bf16.mxu0 %v5328_v17  ;;  %v5372_v14 = vld [vmem:[%s6657_s22 + $0x3c8] sm:$0xff]  }
 0xefa   : > { %v5373_v17 = vld [vmem:[%s6657_s22 + $0x308] sm:$0xff]  }
 0xefb   : > { %4934 = vmatpush3.bf16.msra.mxu1 %v5329_v18  ;;  %v5374_v18 = vld [vmem:[%s6657_s22 + $0x388] sm:$0xff]  }
 0xefc   : > { %4956 = vmatpush3.bf16.msra.mxu0 %v5330_v19  ;;  %4935 = vmatprep.subr.bf16.mxu1 %v5331_v20  ;;  %v5375_v19 = vld [vmem:[%s6657_s22 + $0x340] sm:$0xff]  }
 0xefd   : > { %4957 = vmatprep.subr.bf16.mxu0 %v5332_v21  ;;  %v5376_v20 = vld [vmem:[%s6657_s22 + $0x3c0] sm:$0xff]  }
 0xefe   : > { %v5377_v21 = vld [vmem:[%s6657_s22 + $0x300] sm:$0xff]  }
 0xeff   : > { %4936 = vmatpush3.bf16.msra.mxu1 %v5333_v22  ;;  %v3076_v22 = vmax.f32 %v6336_v25, 0.0  ;;  %v4648_v25 = vld [vmem:[%s6658_s23] ss:$0 sm:$0xff] }
 0xf00   : > { %4958 = vmatpush3.bf16.msra.mxu0 %v5334_v23  ;;  %4937 = vmatprep.subr.bf16.mxu1 %v5335_v24  ;;  %v5378_v23 = vld [vmem:[%s6657_s22 + $0x380] sm:$0xff]   ;;  %v3078_v24 = vmax.f32 %v6339_v27, 0.0 }
 0xf01   : > { %4959 = vmatprep.subr.bf16.mxu0 %v5336_v29  ;;  %v3092_v29 = vpack.c.bf16 %v3076_v22, %v3076_v22 }
 0xf03   : > { %4938 = vmatpush3.bf16.msra.mxu1 %v5337_v30  ;;  %v3094_v30 = vpack.c.bf16 %v3078_v24, %v3078_v24 }
 0xf04   : > { %4960 = vmatpush3.bf16.msra.mxu0 %v5338_v59  ;;  %4939 = vmatprep.subr.bf16.mxu1 %v5339_v32 }
 0xf05   : > { %4961 = vmatprep.subr.bf16.mxu0 %v5340_v38 }
 0xf07   : > { %4940 = vmatpush3.bf16.msra.mxu1 %v5341_v42 }
 0xf08   : > { %4962 = vmatpush3.bf16.msra.mxu0 %v5342_v49  ;;  %4941 = vmatprep.subr.bf16.mxu1 %v5343_v15 }
 0xf09   : > { %4963 = vmatprep.subr.bf16.mxu0 %v5344_v57 }
 0xf0b   : > { %4942 = vmatpush3.bf16.msra.mxu1 %v5345_v63 }
 0xf0c   : > { %4964 = vmatpush3.bf16.msra.mxu0 %v5346_v56  ;;  %4971 = vmatprep.subr.bf16.mxu1 %v5347_v43 }
 0xf0d   : > { %4993 = vmatprep.subr.bf16.mxu0 %v5348_v28 }
 0xf0e   : > { %4320 = vmatmul.mubr.bf16.vlgmr.msra.gmra.mxu1 %v3088_v1 }
 0xf0f   : > { %4360 = vmatmul.mubr.bf16.vlgmr.msra.gmra.mxu0 %v3090_v26  ;;  %4972 = vmatpush3.bf16.msra.mxu1 %v5349_v0 }
 0xf10   : > { %4399 = vmatprep.mubr.bf16.mxu1 %v3093_v34  ;;  %4994 = vmatpush3.bf16.msra.mxu0 %v5350_v45 }
 0xf11   : > { %4439 = vmatprep.mubr.bf16.mxu0 %v3095_v36  ;;  %4973 = vmatprep.subr.bf16.mxu1 %v5351_v46 }
 0xf12   : > { %4995 = vmatprep.subr.bf16.mxu0 %v5352_v35 }
 0xf13   : > { %4974 = vmatpush3.bf16.msra.mxu1 %v5353_v47 }
 0xf14   : > { %4996 = vmatpush3.bf16.msra.mxu0 %v5354_v39  ;;  %4975 = vmatprep.subr.bf16.mxu1 %v5355_v48 }
 0xf15   : > { %4997 = vmatprep.subr.bf16.mxu0 %v5356_v50 }
 0xf17   : > { %4976 = vmatpush3.bf16.msra.mxu1 %v5357_v51 }
 0xf18   : > { %4998 = vmatpush3.bf16.msra.mxu0 %v5358_v53  ;;  %4977 = vmatprep.subr.bf16.mxu1 %v5359_v54 }
 0xf19   : > { %4999 = vmatprep.subr.bf16.mxu0 %v5360_v55 }
 0xf1b   : > { %4978 = vmatpush3.bf16.msra.mxu1 %v5361_v2 }
 0xf1c   : > { %5000 = vmatpush3.bf16.msra.mxu0 %v5362_v3  ;;  %4979 = vmatprep.subr.bf16.mxu1 %v5363_v52 }
 0xf1d   : > { %5001 = vmatprep.subr.bf16.mxu0 %v5364_v4 }
 0xf1f   : > { %4980 = vmatpush3.bf16.msra.mxu1 %v5365_v5 }
 0xf20   : > { %5002 = vmatpush3.bf16.msra.mxu0 %v5366_v6  ;;  %4981 = vmatprep.subr.bf16.mxu1 %v5367_v7 }
 0xf21   : > { %5003 = vmatprep.subr.bf16.mxu0 %v5368_v9 }
 0xf23   : > { %4982 = vmatpush3.bf16.msra.mxu1 %v5369_v10 }
 0xf24   : > { %5004 = vmatpush3.bf16.msra.mxu0 %v5370_v12  ;;  %4983 = vmatprep.subr.bf16.mxu1 %v5371_v13 }
 0xf25   : > { %5005 = vmatprep.subr.bf16.mxu0 %v5372_v14 }
 0xf27   : > { %4984 = vmatpush3.bf16.msra.mxu1 %v5373_v17 }
 0xf28   : > { %5006 = vmatpush3.bf16.msra.mxu0 %v5374_v18  ;;  %4985 = vmatprep.subr.bf16.mxu1 %v5375_v19 }
 0xf29   : > { %5007 = vmatprep.subr.bf16.mxu0 %v5376_v20 }
 0xf2b   : > { %4986 = vmatpush3.bf16.msra.mxu1 %v5377_v21 }
 0xf2c   : > { %5008 = vmatpush3.bf16.msra.mxu0 %v5378_v23 }
 0xf2e   : > { %4400 = vmatmul.mubr.bf16.vlgmr.msra.gmra.mxu1 %v3092_v29 }
 0xf2f   : > { %4440 = vmatmul.mubr.bf16.vlgmr.msra.gmra.mxu0 %v3094_v30 }
 0xf8e   : > { %v4855_v33 = vpop.f32.mrf.mxu1  ;;  %v4877_v59 = vpop.f32.mrf.mxu0 }
 0xf90   : > { %v4856_v32 = vpop.f32.mrf.mxu1  ;;  %v4878_v37 = vpop.f32.mrf.mxu0 }
 0xf91   : > { %v4857_v38 = vadd.f32 %v4856_v32, %v4855_v33  ;;  %v4879_v61 = vadd.f32 %v4878_v37, %v4877_v59 }
 0xf92   : > { %v4858_v40 = vpop.f32.mrf.mxu1  ;;  %v4880_v42 = vpop.f32.mrf.mxu0 }
 0xf93   : > { %v4162_v27 = vadd.f32 %v4857_v38, %v4648_v25 }
 0xf94   : > { %v4859_v62 = vpop.f32.mrf.mxu1  ;;  %v4881_v49 = vpop.f32.mrf.mxu0 }
 0xf95   : > { %v4202_v15 = vadd.f32 %v4879_v61, %v4162_v27 }
 0xfae   : > { %v4899_v60 = vpop.f32.mrf.mxu1  ;;  %v4921_v57 = vpop.f32.mrf.mxu0 }
 0xfb0   : > { %v4900_v16 = vpop.f32.mrf.mxu1  ;;  %v4922_v41 = vpop.f32.mrf.mxu0 }
 0xfb1   : > { %v4901_v46 = vadd.f32 %v4900_v16, %v4899_v60  ;;  %v4923_v35 = vadd.f32 %v4922_v41, %v4921_v57 }
 0xfb2   : > { %v4902_v63 = vpop.f32.mrf.mxu1  ;;  %v4924_v8 = vpop.f32.mrf.mxu0 }
 0xfb3   : > { %v4242_v34 = vadd.f32 %v4901_v46, %v4202_v15 }
 0xfb4   : > { %v4903_v56 = vpop.f32.mrf.mxu1  ;;  %v4925_v43 = vpop.f32.mrf.mxu0 }
 0xfb5   : > { %v4282_v47 = vadd.f32 %v4923_v35, %v4242_v34 }
 0xfce   : > { %v4943_v31 = vpop.f32.mrf.mxu1 }
 0xfcf   : > { %v4965_v28 = vpop.f32.mrf.mxu0 }
 0xfd0   : > { %v4944_v11 = vpop.f32.mrf.mxu1 }
 0xfd1   : > { %v4966_v44 = vpop.f32.mrf.mxu0  ;;  %v4945_v36 = vadd.f32 %v4944_v11, %v4943_v31 }
 0xfd2   : > { %v4946_v0 = vpop.f32.mrf.mxu1  ;;  %v4967_v50 = vadd.f32 %v4966_v44, %v4965_v28 }
 0xfd3   : > { %v4968_v1 = vpop.f32.mrf.mxu0  ;;  %v4322_v39 = vadd.f32 %v4945_v36, %v4282_v47 }
 0xfd4   : > { %v4947_v45 = vpop.f32.mrf.mxu1 }
 0xfd5   : > { %v4969_v26 = vpop.f32.mrf.mxu0  ;;  %v4362_v54 = vadd.f32 %v4967_v50, %v4322_v39 }
 0xfee   : > { %v4987_v48 = vpop.f32.mrf.mxu1 }
 0xfef   : > { %v5009_v51 = vpop.f32.mrf.mxu0 }
 0xff0   : > { %v4988_v53 = vpop.f32.mrf.mxu1 }
 0xff1   : > { %v4989_v55 = vadd.f32 %v4988_v53, %v4987_v48  ;;  %v5010_v2 = vpop.f32.mrf.mxu0 }
 0xff2   : > { %v4990_v3 = vpop.f32.mrf.mxu1  ;;  %v5011_v4 = vadd.f32 %v5010_v2, %v5009_v51 }
 0xff3   : > { %v4402_v52 = vadd.f32 %v4989_v55, %v4362_v54  ;;  %v5012_v5 = vpop.f32.mrf.mxu0 }
 0xff4   : > { %v4991_v6 = vpop.f32.mrf.mxu1 }
 0xff5   : > { %v4442_v7 = vadd.f32 %v5011_v4, %v4402_v52  ;;  %v5013_v9 = vpop.f32.mrf.mxu0 }
 0xff7   : > { %v4447_v10 = vadd.f32 %v4442_v7, %v5992_v58 }
 0xff9   : > { %4448 = vst.msk [vmem:[%s767_s27] sm:$0xff] %vm794_vm0, %v4447_v10 }
 0xffa   : > { %5437 = shalt.err (!%p5434_p3)
}
 0xffb   : > { %s5438_s4 = scalar_lea.hbm %s4461_s0, 128  ;;  %s5442_s27 = scalar_lea.hbm %s6659_s24, 256 }
 0xffc   : > { %p5439_p4 = scmp.ne.s32.totalorder %s4461_s0, %s5438_s4  ;;  %p5443_p9 = scmp.lt.s32.totalorder %s4461_s0, %s6659_s24 }
 0xffd   : > { %p5444_p10 = scmp.lt.s32.totalorder %s5442_s27, %s5438_s4 }
 0xffe   : > { %p5440_p7 = pnand %p5439_p4, %p5658_p5 }
 0xfff   : > { %p5445_p11 = por %p5444_p10, %p5443_p9 }
0x1000   : > { %p5441_p8 = pneg %p5440_p7 }
0x1002   : > { %p5446_p12 = pnand %p5445_p11, %p5441_p8 }
0x1004   : > { %5449 = shalt.err (!%p5446_p12)
}
0x1005   : > { %5183 = dma.vmem_to_hbm [thread:$0]  (%p5658_p5), %s4464_s30, 128, %s4461_s0, %s4450_s29  }
0x1006 PF: > { %s6710_s1 = sld [smem:[#allocation5_spill]]  ;;  %p5189_p13 = scmp.ge.s32.totalorder %s5484_s28, 2 }
0x1008   : > { %p5186_p0 = pnand %p5189_p13, %p5662_p6 }
0x100a   : > { %p5187_p1 = pneg %p5186_p0 }
0x100c   : > { %s4475_s6 = sand.u32 1, %s6710_s1  }
0x100d   : > { %s4476_s5 = scalar_lea.sflag [#allocation3], %s4475_s6 }
0x100e   : > { %5467 = dma.done.wait (%p5187_p1), %s4476_s5, 128  }
0x100f   : > { %5469 = vsyncadd (%p5187_p1), %s4476_s5, 4294967168  ;;  %s6712_s28 = sld [smem:[#allocation7_spill]]  ;;  %s6715_s5 = smov %s5476_s26 }
0x1010   : > { %s6713_s9 = sld [smem:[#allocation6_spill]] }
0x1011   : > { %s6714_s27 = sld [smem:[#allocation8_spill]] }
0x1015   : > { %p34_p2 = scmp.ge.s32.totalorder %s6712_s28, 4  }
0x1016   : > { %s6716_s26 = smov %s6713_s9 }
0x1017   :  { %36 = sbr.rel (!%p34_p2) target bundleno = 14 (0xe), region = 160 }
0x101c   :  { %4481 = vsyncpa [#allocation3], 1 }
0x101d   :  { %4483 = vsyncpa [#allocation3 + $0x1], 1 }

</bundles_post_ra>
